<compile_context>
chip_gen: v5e
topology: v5e:2x2
jax: 0.10.0
libtpu: 0.0.40
codegen_flags: <defaults>
</compile_context>

<pallas_src>
import functools

import jax
import jax.numpy as jnp
from jax import lax
from jax.experimental import pallas as pl
from jax.experimental.pallas import tpu as pltpu


def _gs_kernel(x_ref, w_ref, b_ref, *rest, inv_temperature, mode, valid_v, padded_v):
    """mode in {"soft", "hard", "greedy"}.

    soft   : training sample                 softmax((logits + g) * (1/T))
    hard   : training + straight_through     one-hot(argmax(logits + g))
    greedy : eval                            one-hot(argmax(logits))
    """
    if mode == "greedy":
        (o_ref,) = rest
        g_ref = None
    else:
        g_ref, o_ref = rest

    # agent: Linear layer on the MXU (f32 accumulate).
    # For large D_in/V on v6e/v7x, cast x/w to bf16 and keep preferred_element_type=f32.
    logits = jnp.dot(x_ref[...], w_ref[...],
                     preferred_element_type=jnp.float32) + b_ref[...]

    col = lax.broadcasted_iota(jnp.int32, logits.shape, dimension=1)
    if valid_v != padded_v:
        # Columns >= valid_v are lane padding only: push them out of the race.
        logits = jnp.where(col < valid_v, logits, jnp.float32(-1e30))

    y = logits if mode == "greedy" else logits + g_ref[...]

    if mode == "soft":
        # numerically stable softmax((logits + g) * (1/T))
        y = y * jnp.float32(inv_temperature)
        y = y - jnp.max(y, axis=-1, keepdims=True)
        e = jnp.exp(y)
        o_ref[...] = (e / jnp.sum(e, axis=-1, keepdims=True)).astype(o_ref.dtype)
    else:
        # softmax / temperature are strictly monotone => argmax(soft) == argmax(y);
        # hard/eval paths need no exp / sum / reciprocal at all.
        m = jnp.max(y, axis=-1, keepdims=True)
        # first (lowest-index) maximal column, matching torch.max tie-breaking
        idx = jnp.min(jnp.where(y == m, col, padded_v), axis=-1, keepdims=True)
        o_ref[...] = (col == idx).astype(o_ref.dtype)
        # TODO(synk): straight-through *gradient* (hard + soft - stop_grad(soft)) requires a
        # custom_vjp around the pallas_call; only the forward value is produced here.


def _pick_tile_b(batch, d_in, v_pad, vmem_budget_bytes=8 * 1024 * 1024):
    """Largest batch tile (divisor of batch) whose double-buffered working set stays
    under a conservative VMEM budget (safe even on v7x's 64 MiB / 32 MiB scoped VMEM)."""
    resident = (d_in * v_pad + v_pad) * 4                  # W^T + bias stay resident
    for t in (256, 128, 64, 32, 16, 8):
        if batch % t:
            continue
        per_step = 2 * t * (d_in + 2 * v_pad) * 4          # x + gumbel + out, double-buffered
        if resident + per_step <= vmem_budget_bytes:
            return t
    return batch                                           # tiny / odd batch: one block


def gumbel_softmax_linear(x, w_t, b, key=None, *, temperature=1.0,
                          training=True, straight_through=False):
    """Forward pass of GumbelSoftmaxWrapper(nn.Linear(D_in, V)).

    x:   [B, D_in] float32
    w_t: [D_in, V] float32  (transposed PyTorch Linear weight)
    b:   [1, V]    float32
    key: jax PRNG key (used only when training=True)
    Returns [B, V] float32.
    """
    B, d_in = x.shape
    V = w_t.shape[1]
    v_pad = max(128, ((V + 127) // 128) * 128)      # lane-dense output (unmasked stores)
    tile_b = _pick_tile_b(B, d_in, v_pad)

    if v_pad != V:
        w_p = jnp.pad(w_t, ((0, 0), (0, v_pad - V)))
        b_p = jnp.pad(b, ((0, 0), (0, v_pad - V)))
    else:
        w_p, b_p = w_t, b

    mode = ("hard" if straight_through else "soft") if training else "greedy"
    kernel = functools.partial(
        _gs_kernel, inv_temperature=1.0 / float(temperature),
        mode=mode, valid_v=V, padded_v=v_pad)

    in_specs = [
        pl.BlockSpec((tile_b, d_in), lambda i: (i, 0)),    # x: tiled over batch
        pl.BlockSpec((d_in, v_pad), lambda i: (0, 0)),     # W^T: resident across the grid
        pl.BlockSpec((1, v_pad), lambda i: (0, 0)),        # bias: resident
    ]
    inputs = [x, w_p, b_p]

    if mode != "greedy":
        # Per-row Gumbel noise drawn once: i.i.d. across all batch tiles (no seed replay),
        # and portable (no Mosaic-only PRNG primitives in the kernel body).
        g = jax.random.gumbel(key, (B, V), dtype=jnp.float32)
        if v_pad != V:
            g = jnp.pad(g, ((0, 0), (0, v_pad - V)))
        in_specs.append(pl.BlockSpec((tile_b, v_pad), lambda i: (i, 0)))
        inputs.append(g)

    out = pl.pallas_call(
        kernel,
        out_shape=jax.ShapeDtypeStruct((B, v_pad), jnp.float32),
        grid=(B // tile_b,),
        in_specs=in_specs,
        out_specs=pl.BlockSpec((tile_b, v_pad), lambda i: (i, 0)),
        compiler_params=pltpu.CompilerParams(
            dimension_semantics=("parallel",),   # batch tiles independent: megacore split
        ),
    )(*inputs)
    return out[:, :V] if v_pad != V else out


if __name__ == "__main__":
    root = jax.random.PRNGKey(0)
    kx, kw, kb, kg = jax.random.split(root, 4)

    B, D_IN, VOCAB = 512, 32, 16
    TEMP = 0.7

    x = jax.random.uniform(kx, (B, D_IN), dtype=jnp.float32)
    # PyTorch Linear weight layout is [VOCAB, D_IN]; the kernel takes W^T = [D_IN, VOCAB]
    w = jax.random.uniform(kw, (VOCAB, D_IN), minval=-0.1, maxval=0.1, dtype=jnp.float32)
    b = jax.random.uniform(kb, (1, VOCAB), minval=-0.1, maxval=0.1, dtype=jnp.float32)
    w_t = jnp.transpose(w)

    # pure-JAX reference (same key => same Gumbel noise as the wrapper draws)
    logits_ref = jnp.dot(x, w_t, precision=lax.Precision.HIGHEST) + b
    g_ref = jax.random.gumbel(kg, (B, VOCAB), dtype=jnp.float32)

    def top2_margin(a):
        s = jnp.sort(a, axis=-1)
        return s[:, -1] - s[:, -2]

    # --- training, relaxed (soft) sample ---
    soft = gumbel_softmax_linear(x, w_t, b, kg, temperature=TEMP,
                                 training=True, straight_through=False)
    jax.block_until_ready(soft)
    soft_ref = jax.nn.softmax((logits_ref + g_ref) / TEMP, axis=-1)
    assert soft.shape == (B, VOCAB)
    assert jnp.allclose(jnp.sum(soft, axis=-1), 1.0, atol=1e-5)
    assert float(jnp.max(jnp.abs(soft - soft_ref))) < 3e-2

    # --- training, straight-through: forward value is an exact one-hot ---
    hard = gumbel_softmax_linear(x, w_t, b, kg, temperature=TEMP,
                                 training=True, straight_through=True)
    jax.block_until_ready(hard)
    assert jnp.allclose(jnp.sum(hard, axis=-1), 1.0)
    assert bool(jnp.all(jnp.max(hard, axis=-1) == 1.0))
    assert bool(jnp.all(jnp.min(hard, axis=-1) == 0.0))
    noisy = logits_ref + g_ref
    confident = top2_margin(noisy) > 1e-2          # skip near-ties (matmul rounding)
    assert bool(jnp.all(jnp.where(
        confident,
        jnp.argmax(hard, axis=-1) == jnp.argmax(noisy, axis=-1),
        True)))

    # --- eval: greedy one-hot over logits ---
    greedy = gumbel_softmax_linear(x, w_t, b, training=False)
    jax.block_until_ready(greedy)
    assert jnp.allclose(jnp.sum(greedy, axis=-1), 1.0)
    assert bool(jnp.all(jnp.max(greedy, axis=-1) == 1.0))
    confident = top2_margin(logits_ref) > 1e-2
    assert bool(jnp.all(jnp.where(
        confident,
        jnp.argmax(greedy, axis=-1) == jnp.argmax(logits_ref, axis=-1),
        True)))

    print("KERNEL_OK")
</pallas_src>

<mosaic_0001>
module attributes {stable_mosaic.version = 11 : i64} {
  func.func @_gs_kernel(%arg0: i32, %arg1: memref<256x32xf32, #tpu.memory_space<vmem>>, %arg2: memref<32x128xf32, #tpu.memory_space<vmem>>, %arg3: memref<1x128xf32, #tpu.memory_space<vmem>>, %arg4: memref<256x128xf32, #tpu.memory_space<vmem>>, %arg5: memref<256x128xf32, #tpu.memory_space<vmem>>) attributes {dimension_semantics = [#tpu.dimension_semantics<parallel>], iteration_bounds = array<i64: 2>, scalar_prefetch = 0 : i64, scratch_operands = 0 : i64, tpu.core_type = #tpu.core_type<tc>, window_params = [{transform_indices = @transform_0, window_bounds = array<i64: 256, 32>}, {pipeline_mode = #tpu.pipeline_mode<synchronous>, transform_indices = @transform_1, window_bounds = array<i64: 32, 128>}, {pipeline_mode = #tpu.pipeline_mode<synchronous>, transform_indices = @transform_2, window_bounds = array<i64: 1, 128>}, {transform_indices = @transform_3, window_bounds = array<i64: 256, 128>}, {transform_indices = @transform_4, window_bounds = array<i64: 256, 128>}]} {
    %c0 = arith.constant 0 : index
    %c0_0 = arith.constant 0 : index
    %0 = vector.load %arg1[%c0, %c0_0] : memref<256x32xf32, #tpu.memory_space<vmem>>, vector<256x32xf32>
    %c0_1 = arith.constant 0 : index
    %c0_2 = arith.constant 0 : index
    %1 = vector.load %arg2[%c0_1, %c0_2] : memref<32x128xf32, #tpu.memory_space<vmem>>, vector<32x128xf32>
    %cst = arith.constant dense<0.000000e+00> : vector<256x128xf32>
    %2 = tpu.matmul %0, %1, %cst {dimension_numbers = #tpu.dot_dimension_numbers<[1], [0], [0], [1], [0, 0, 1, 1], [], []>} : vector<256x32xf32>, vector<32x128xf32>, vector<256x128xf32> -> vector<256x128xf32>
    %c0_3 = arith.constant 0 : index
    %c0_4 = arith.constant 0 : index
    %3 = vector.load %arg3[%c0_3, %c0_4] : memref<1x128xf32, #tpu.memory_space<vmem>>, vector<1x128xf32>
    %4 = vector.broadcast %3 : vector<1x128xf32> to vector<256x128xf32>
    %5 = arith.addf %2, %4 : vector<256x128xf32>
    %6 = tpu.iota {dimensions = array<i32: 1>} : vector<256x128xi32>
    %c16_i32 = arith.constant 16 : i32
    %7 = vector.broadcast %c16_i32 : i32 to vector<256x128xi32>
    %8 = arith.cmpi slt, %6, %7 : vector<256x128xi32>
    %cst_5 = arith.constant -1.000000e+30 : f32
    %9 = vector.broadcast %cst_5 : f32 to vector<256x128xf32>
    %10 = arith.select %8, %5, %9 : vector<256x128xi1>, vector<256x128xf32>
    %c0_6 = arith.constant 0 : index
    %c0_7 = arith.constant 0 : index
    %11 = vector.load %arg4[%c0_6, %c0_7] : memref<256x128xf32, #tpu.memory_space<vmem>>, vector<256x128xf32>
    %12 = arith.addf %10, %11 : vector<256x128xf32>
    %cst_8 = arith.constant 1.42857146 : f32
    %13 = vector.broadcast %cst_8 : f32 to vector<256x128xf32>
    %14 = arith.mulf %12, %13 : vector<256x128xf32>
    %cst_9 = arith.constant dense<0xFF800000> : vector<256xf32>
    %15 = vector.multi_reduction <maximumf>, %14, %cst_9 [1] : vector<256x128xf32> to vector<256xf32>
    %16 = vector.shape_cast %15 : vector<256xf32> to vector<256x1xf32>
    %17 = vector.broadcast %16 : vector<256x1xf32> to vector<256x128xf32>
    %18 = arith.subf %14, %17 : vector<256x128xf32>
    %19 = math.exp %18 : vector<256x128xf32>
    %cst_10 = arith.constant dense<0.000000e+00> : vector<256xf32>
    %20 = vector.multi_reduction <add>, %19, %cst_10 [1] : vector<256x128xf32> to vector<256xf32>
    %21 = vector.shape_cast %20 : vector<256xf32> to vector<256x1xf32>
    %22 = vector.broadcast %21 : vector<256x1xf32> to vector<256x128xf32>
    %23 = arith.divf %19, %22 : vector<256x128xf32>
    %c0_11 = arith.constant 0 : index
    %c0_12 = arith.constant 0 : index
    %24 = vector.load %arg5[%c0_11, %c0_12] : memref<256x128xf32, #tpu.memory_space<vmem>>, vector<256x128xf32>
    tpu.vector_store %arg5[%c0_11, %c0_12], %23 {strides = array<i32>} : memref<256x128xf32, #tpu.memory_space<vmem>>, vector<256x128xf32>,
    return
  }
  func.func @transform_0(%arg0: i32) -> (i32, i32) {
    %c0_i32 = arith.constant 0 : i32
    %c0_i32_0 = arith.constant 0 : i32
    return %arg0, %c0_i32 : i32, i32
  }
  func.func @transform_1(%arg0: i32) -> (i32, i32) {
    %c0_i32 = arith.constant 0 : i32
    %c0_i32_0 = arith.constant 0 : i32
    %c0_i32_1 = arith.constant 0 : i32
    return %c0_i32, %c0_i32_0 : i32, i32
  }
  func.func @transform_2(%arg0: i32) -> (i32, i32) {
    %c0_i32 = arith.constant 0 : i32
    %c0_i32_0 = arith.constant 0 : i32
    %c0_i32_1 = arith.constant 0 : i32
    return %c0_i32, %c0_i32_0 : i32, i32
  }
  func.func @transform_3(%arg0: i32) -> (i32, i32) {
    %c0_i32 = arith.constant 0 : i32
    %c0_i32_0 = arith.constant 0 : i32
    return %arg0, %c0_i32 : i32, i32
  }
  func.func @transform_4(%arg0: i32) -> (i32, i32) {
    %c0_i32 = arith.constant 0 : i32
    %c0_i32_0 = arith.constant 0 : i32
    return %arg0, %c0_i32 : i32, i32
  }
}

</mosaic_0001>

<bundles_post_ra>
// kernel: tpu_custom_call.1
= control target key start
LH: loop header
LB: loop body
LE: loop exit
PB: predicated region body
PF: predicated region fallthrough
CT: control target
= control target key end

     0   :  { %9 = vsyncpa [#allocation3], 0  ;;  %s2694_s0 = inlined_call_operand.vmem [shape: f32[512,32], index: 0, kind: input, shape index: {}]   ;;  %s2695_s1 = inlined_call_operand.vmem [shape: f32[32,128], index: 1, kind: input, shape index: {}]   ;;  %s2696_s2 = inlined_call_operand.vmem [shape: f32[1,128], index: 2, kind: input, shape index: {}]   ;;  %s2697_s3 = inlined_call_operand.vmem [shape: f32[512,128], index: 3, kind: input, shape index: {}]   ;;  %s2698_s4 = inlined_call_operand.hbm [shape: f32[512,128], index: 4, kind: output, shape index: {}]  }
   0x1   :  { %11 = vsyncpa [#allocation3 + $0x1], 0  ;;  %s1748_s15 = smov 0   ;;  %s1750_s16 = smov 0  }
   0x2   :  { %s1752_s17 = smov 0   ;;  %s1754_s18 = smov 0  }
   0x3 LB: > { %s1769_s19 = sadd.s32 4294967295, %s1719_s18   ;;  %s1428_s20 = sadd.s32 4294967294, %s1719_s18   ;;  %s1719_s18 = sphi %s1754_s18, %s2736_s18   ;;  %s1715_s17 = sphi %s1752_s17, %s2735_s17   ;;  %s1711_s16 = sphi %s1750_s16, %s2734_s16   ;;  %s1707_s15 = sphi %s1748_s15, %s2733_s15  }
   0x4   : > { %s1773_s21 = sadd.s32 1, %s1719_s18   ;;  %s118_s22 = sadd.s32 1, %s1715_s17 }
   0x5   : > { %s115_s23 = ssub.s32 %s1719_s18, %s1773_s21  ;;  %p128_p0 = scmp.ne.s32.totalorder %s1715_s17, %s1711_s16 }
   0x6   : > { %p116_p1 = scmp.eq.s32.totalorder %s115_s23, 0  ;;  %p129_p2 = scmp.eq.s32.totalorder %s1769_s19, 1 }
   0x7   : > { %p134_p3 = scmp.ne.s32.totalorder %s1711_s16, %s1707_s15  ;;  %p135_p4 = scmp.eq.s32.totalorder %s1428_s20, 1 }
   0x8   : > { %s1784_s24 = scalar_select %p116_p1, %s1715_s17, %s118_s22  }
   0x9   : > { %p1786_p5 = por %p129_p2, %p128_p0  ;;  %p1790_p6 = por %p135_p4, %p134_p3 }
   0xa   : > { %p1431_p7 = scmp.ge.s32.totalorder %s1719_s18, 1  ;;  %p177_p8 = scmp.lt.s32.totalorder %s1719_s18, 3 }
   0xc   : > { %p178_p9 = pnand %p1431_p7, %p177_p8 }
   0xd   : > { %s1433_s5 = sshll.u32 (!%p178_p9), %s1769_s19, 5  ;;  %s205_s28 = sand.u32 (!%p178_p9), 1, %s1711_s16  }
   0xe   : > { %181 = sbr.rel (%p178_p9) target bundleno = 533 (0x215), region = 36  ;;  %p209_p10 = scmp.lt.s32.totalorder (!%p178_p9), %s1433_s5, 63 }
   0xf   : > { %s1432_s29 = sshll.u32 (!%p178_p9), %s205_s28, 8  ;;  %s1677_s20 = scalar_lea.hbm (!%p178_p9), %s2698_s4, 512 }
  0x10   : > { %s2264_s30 = scalar_lea.vmem (!%p178_p9), [#allocation2], %s1432_s29 }
  0x13   : > { %v256_v0 = vld [vmem:[%s2695_s1 + $0x18] sm:$0xff]  ;;  %v255_v1 = vld [vmem:[%s2695_s1 + $0x10] sm:$0xff]  ;;  %v254_v2 = vld [vmem:[%s2695_s1 + $0x8] sm:$0xff]  ;;  %s2738_s5 = smov (!%p209_p10, %s1433_s5), 63  ;;  %vm261_vm0 = vcmask 261120   ;;  %v471_v36 = vlaneseq }
  0x14   : > { %370 = vmatpush.msra.mxu0 %v256_v0  ;;  %1475 = vmatpush.msra.mxu1 %v256_v0  ;;  %v253_v3 = vld [vmem:[%s2695_s1] sm:$0xff]  ;;  %s1434_s10 = sshll.u32 %s2738_s5, 3  ;;  %s1474_s5 = sshll.u32 %s1769_s19, 8 }
  0x15   : > { %1476 = vmatpush.msra.mxu2 %v256_v0  ;;  %1477 = vmatpush.msra.mxu3 %v256_v0  ;;  %s1817_s13 = scalar_lea.vmem %s2694_s0, %s1434_s10  ;;  %v1883_v37 = vand.u32 127, %v471_v36  ;;  %v1888_v38 = vld [vmem:[%s2696_s2] ss:$0 sm:$0xff]  ;;  %s1895_s27 = scalar_lea.vmem %s2697_s3, %s1434_s10 }
  0x16   : > { %371 = vmatpush.msra.mxu0 %v255_v1  ;;  %1478 = vmatpush.msra.mxu1 %v255_v1  ;;  %v221_v4 = vld [vmem:[%s1817_s13] sm:$0xff]  ;;  %v222_v8 = vld [vmem:[%s1817_s13 + $0x8] sm:$0xff]  ;;  %v223_v12 = vld [vmem:[%s1817_s13 + $0x10] sm:$0xff]  ;;  %s1350_s8 = scalar_lea.hbm %s2698_s4, %s1474_s5  ;;  %s1351_s19 = sshll.u32 %s2264_s30, 4  ;;  %s1352_s19 = int_to_ptr.vmem [resolvable:$true] %s1351_s19 }
  0x17   : > { %1479 = vmatpush.msra.mxu2 %v255_v1  ;;  %1480 = vmatpush.msra.mxu3 %v255_v1  ;;  %v229_v5 = vld [vmem:[%s1817_s13 + $0x40] sm:$0xff]  ;;  %v230_v9 = vld [vmem:[%s1817_s13 + $0x48] sm:$0xff]  ;;  %v231_v13 = vld [vmem:[%s1817_s13 + $0x50] sm:$0xff]  ;;  %vm473_vm1 = vcmp.lt.s32.totalorder %v1883_v37, 16  ;;  %s1353_s9 = sshll.u32 %s1350_s8, 4  ;;  %s1339_s10 = scalar_lea.sflag [#allocation3], %s205_s28  ;;  %s1354_s9 = int_to_ptr.hbm [resolvable:$true] %s1353_s9 }
  0x18   : > { %372 = vmatpush.msra.mxu0 %v254_v2  ;;  %1481 = vmatpush.msra.mxu1 %v254_v2  ;;  %v237_v6 = vld [vmem:[%s1817_s13 + $0x80] sm:$0xff]  ;;  %v238_v10 = vld [vmem:[%s1817_s13 + $0x88] sm:$0xff]  ;;  %v247_v14 = vld [vmem:[%s1817_s13 + $0xd0] sm:$0xff]  ;;  %s1671_s11 = sshra.s32 %s1354_s9, 4  ;;  %s1672_s11 = int_to_ptr.hbm [resolvable:$true] %s1671_s11 }
  0x19   : > { %1482 = vmatpush.msra.mxu2 %v254_v2  ;;  %1483 = vmatpush.msra.mxu3 %v254_v2  ;;  %v245_v7 = vld [vmem:[%s1817_s13 + $0xc0] sm:$0xff]  ;;  %v246_v11 = vld [vmem:[%s1817_s13 + $0xc8] sm:$0xff]  ;;  %v239_v15 = vld [vmem:[%s1817_s13 + $0x90] sm:$0xff]  ;;  %s1673_s12 = scalar_lea.hbm %s1672_s11, 256  ;;  %p1678_p0 = scmp.lt.s32.totalorder %s1672_s11, %s2698_s4 }
  0x1a   : > { %373 = vmatpush.msra.mxu0 %v253_v3  ;;  %1484 = vmatpush.msra.mxu1 %v253_v3  ;;  %v224_v16 = vld [vmem:[%s1817_s13 + $0x18] sm:$0xff]  ;;  %v225_v20 = vld [vmem:[%s1817_s13 + $0x20] sm:$0xff]  ;;  %v226_v24 = vld [vmem:[%s1817_s13 + $0x28] sm:$0xff]  ;;  %p1674_p11 = scmp.ne.s32.totalorder %s1672_s11, %s1673_s12  ;;  %p1679_p1 = scmp.lt.s32.totalorder %s1677_s20, %s1673_s12 }
  0x1b   : > { %1485 = vmatpush.msra.mxu2 %v253_v3  ;;  %1486 = vmatpush.msra.mxu3 %v253_v3  ;;  %v232_v17 = vld [vmem:[%s1817_s13 + $0x58] sm:$0xff]  ;;  %v233_v21 = vld [vmem:[%s1817_s13 + $0x60] sm:$0xff]  ;;  %v234_v25 = vld [vmem:[%s1817_s13 + $0x68] sm:$0xff] }
  0x1c   : > { %1437 = vmatmul.msk.f32.vlgmr.msra.gmra.mxu0 %vm261_vm0, %v221_v4  ;;  %1445 = vmatmul.msk.f32.vlgmr.msra.gmra.mxu1 %vm261_vm0, %v229_v5  ;;  %v240_v18 = vld [vmem:[%s1817_s13 + $0x98] sm:$0xff]  ;;  %v241_v22 = vld [vmem:[%s1817_s13 + $0xa0] sm:$0xff]  ;;  %v242_v26 = vld [vmem:[%s1817_s13 + $0xa8] sm:$0xff]  ;;  %p1675_p12 = pnand %p1674_p11, %p1786_p5  ;;  %p1680_p2 = por %p1679_p1, %p1678_p0 }
  0x1d   : > { %1453 = vmatmul.msk.f32.vlgmr.msra.gmra.mxu2 %vm261_vm0, %v237_v6  ;;  %1461 = vmatmul.msk.f32.vlgmr.msra.gmra.mxu3 %vm261_vm0, %v245_v7  ;;  %v248_v19 = vld [vmem:[%s1817_s13 + $0xd8] sm:$0xff]  ;;  %v249_v23 = vld [vmem:[%s1817_s13 + $0xe0] sm:$0xff]  ;;  %v250_v27 = vld [vmem:[%s1817_s13 + $0xe8] sm:$0xff] }
  0x1e   : > { %v227_v28 = vld [vmem:[%s1817_s13 + $0x30] sm:$0xff]  ;;  %v228_v32 = vld [vmem:[%s1817_s13 + $0x38] sm:$0xff]  ;;  %v514_v43 = vld [vmem:[%s1895_s27 + $0x40] sm:$0xff]  ;;  %p1676_p13 = pneg %p1675_p12 }
  0x1f   : > { %v235_v29 = vld [vmem:[%s1817_s13 + $0x70] sm:$0xff]  ;;  %v236_v33 = vld [vmem:[%s1817_s13 + $0x78] sm:$0xff]  ;;  %v506_v44 = vld [vmem:[%s1895_s27] sm:$0xff] }
  0x20   : > { %v243_v30 = vld [vmem:[%s1817_s13 + $0xb0] sm:$0xff]  ;;  %v244_v34 = vld [vmem:[%s1817_s13 + $0xb8] sm:$0xff]  ;;  %v522_v55 = vld [vmem:[%s1895_s27 + $0x80] sm:$0xff]  ;;  %p1681_p3 = pnand %p1680_p2, %p1676_p13 }
  0x21   : > { %v251_v31 = vld [vmem:[%s1817_s13 + $0xf0] sm:$0xff]  ;;  %v252_v35 = vld [vmem:[%s1817_s13 + $0xf8] sm:$0xff]  ;;  %v530_v58 = vld [vmem:[%s1895_s27 + $0xc0] sm:$0xff] }
  0x22   : > { %v507_v5 = vld [vmem:[%s1895_s27 + $0x8] sm:$0xff] }
  0x24   : > { %1438 = vmatmul.msk.f32.gmra.mxu0 %vm261_vm0, %v222_v8  ;;  %1446 = vmatmul.msk.f32.gmra.mxu1 %vm261_vm0, %v230_v9  ;;  %v531_v8 = vld [vmem:[%s1895_s27 + $0xc8] sm:$0xff] }
  0x25   : > { %1454 = vmatmul.msk.f32.gmra.mxu2 %vm261_vm0, %v238_v10  ;;  %1462 = vmatmul.msk.f32.gmra.mxu3 %vm261_vm0, %v246_v11  ;;  %v523_v10 = vld [vmem:[%s1895_s27 + $0x88] sm:$0xff] }
  0x2c   : > { %1439 = vmatmul.msk.f32.gmra.mxu0 %vm261_vm0, %v223_v12  ;;  %1447 = vmatmul.msk.f32.gmra.mxu1 %vm261_vm0, %v231_v13 }
  0x2d   : > { %1463 = vmatmul.msk.f32.gmra.mxu3 %vm261_vm0, %v247_v14  ;;  %1455 = vmatmul.msk.f32.gmra.mxu2 %vm261_vm0, %v239_v15 }
  0x34   : > { %1440 = vmatmul.msk.f32.gmra.mxu0 %vm261_vm0, %v224_v16  ;;  %1448 = vmatmul.msk.f32.gmra.mxu1 %vm261_vm0, %v232_v17 }
  0x35   : > { %1456 = vmatmul.msk.f32.gmra.mxu2 %vm261_vm0, %v240_v18  ;;  %1464 = vmatmul.msk.f32.gmra.mxu3 %vm261_vm0, %v248_v19 }
  0x3c   : > { %1441 = vmatmul.msk.f32.gmra.mxu0 %vm261_vm0, %v225_v20  ;;  %1449 = vmatmul.msk.f32.gmra.mxu1 %vm261_vm0, %v233_v21  ;;  %v508_v20 = vld [vmem:[%s1895_s27 + $0x10] sm:$0xff] }
  0x3d   : > { %1457 = vmatmul.msk.f32.gmra.mxu2 %vm261_vm0, %v241_v22  ;;  %1465 = vmatmul.msk.f32.gmra.mxu3 %vm261_vm0, %v249_v23 }
  0x44   : > { %1442 = vmatmul.msk.f32.gmra.mxu0 %vm261_vm0, %v226_v24  ;;  %1450 = vmatmul.msk.f32.gmra.mxu1 %vm261_vm0, %v234_v25 }
  0x45   : > { %1458 = vmatmul.msk.f32.gmra.mxu2 %vm261_vm0, %v242_v26  ;;  %1466 = vmatmul.msk.f32.gmra.mxu3 %vm261_vm0, %v250_v27 }
  0x4c   : > { %1443 = vmatmul.msk.f32.gmra.mxu0 %vm261_vm0, %v227_v28  ;;  %1451 = vmatmul.msk.f32.gmra.mxu1 %vm261_vm0, %v235_v29  ;;  %v515_v28 = vld [vmem:[%s1895_s27 + $0x48] sm:$0xff] }
  0x4d   : > { %1459 = vmatmul.msk.f32.gmra.mxu2 %vm261_vm0, %v243_v30  ;;  %1467 = vmatmul.msk.f32.gmra.mxu3 %vm261_vm0, %v251_v31 }
  0x54   : > { %1444 = vmatmul.msk.f32.gmra.mxu0 %vm261_vm0, %v228_v32  ;;  %1452 = vmatmul.msk.f32.gmra.mxu1 %vm261_vm0, %v236_v33  ;;  %v532_v32 = vld [vmem:[%s1895_s27 + $0xd0] sm:$0xff] }
  0x55   : > { %1460 = vmatmul.msk.f32.gmra.mxu2 %vm261_vm0, %v244_v34  ;;  %1468 = vmatmul.msk.f32.gmra.mxu3 %vm261_vm0, %v252_v35 }
  0x99   : > { %v375_v39 = vpop.f32.mrf.mxu0  ;;  %v399_v40 = vpop.f32.mrf.mxu1 }
  0x9a   : > { %v376_v41 = vadd.f32 %v1888_v38, %v375_v39  ;;  %v400_v42 = vadd.f32 %v1888_v38, %v399_v40 }
  0x9c   : > { %v474_v45 = vsel %vm473_vm1, %v376_v41, -1e+30  ;;  %v482_v46 = vsel %vm473_vm1, %v400_v42, -1e+30 }
  0x9d   : > { %v546_v47 = vadd.f32 %v514_v43, %v482_v46  ;;  %v538_v48 = vadd.f32 %v506_v44, %v474_v45  ;;  %v517_v44 = vld [vmem:[%s1895_s27 + $0x58] sm:$0xff]  ;;  %v516_v45 = vld [vmem:[%s1895_s27 + $0x50] sm:$0xff] }
  0x9f   : > { %v1906_v49 = vmul.f32 1.4285715, %v546_v47  ;;  %v1908_v50 = vmul.f32 1.4285715, %v538_v48  ;;  %v524_v48 = vld [vmem:[%s1895_s27 + $0x90] sm:$0xff] }
  0xa0   : > { %v423_v51 = vpop.f32.mrf.mxu2  ;;  %v447_v52 = vpop.f32.mrf.mxu3 }
  0xa1   : > { %v424_v53 = vadd.f32 %v1888_v38, %v423_v51  ;;  %v448_v54 = vadd.f32 %v1888_v38, %v447_v52  ;;  %618 = vmax.xlane.f32.xlu2 %v1906_v49  ;;  %602 = vmax.xlane.f32.xlu0 %v1908_v50  ;;  %v378_v56 = vpop.f32.mrf.mxu0  ;;  %v402_v57 = vpop.f32.mrf.mxu1 }
  0xa2   : > { %v379_v62 = vadd.f32 %v1888_v38, %v378_v56  ;;  %v403_v16 = vadd.f32 %v1888_v38, %v402_v57 }
  0xa3   : > { %v490_v59 = vsel %vm473_vm1, %v424_v53, -1e+30  ;;  %v498_v60 = vsel %vm473_vm1, %v448_v54, -1e+30 }
  0xa4   : > { %v554_v61 = vadd.f32 %v522_v55, %v490_v59  ;;  %v562_v63 = vadd.f32 %v530_v58, %v498_v60  ;;  %v475_v4 = vsel %vm473_vm1, %v379_v62, -1e+30  ;;  %v483_v24 = vsel %vm473_vm1, %v403_v16, -1e+30 }
  0xa5   : > { %v539_v15 = vadd.f32 %v507_v5, %v475_v4  ;;  %v547_v39 = vadd.f32 %v515_v28, %v483_v24  ;;  %v526_v28 = vld [vmem:[%s1895_s27 + $0xa0] sm:$0xff] }
  0xa6   : > { %v1921_v0 = vmul.f32 1.4285715, %v554_v61  ;;  %v1923_v1 = vmul.f32 1.4285715, %v562_v63 }
  0xa7   : > { %v1947_v23 = vmul.f32 1.4285715, %v539_v15  ;;  %v1975_v51 = vmul.f32 1.4285715, %v547_v39 }
  0xa8   : > { %v426_v2 = vpop.f32.mrf.mxu2  ;;  %v450_v3 = vpop.f32.mrf.mxu3  ;;  %634 = vmax.xlane.f32.xlu1 %v1921_v0 }
  0xa9   : > { %v427_v6 = vadd.f32 %v1888_v38, %v426_v2  ;;  %v451_v7 = vadd.f32 %v1888_v38, %v450_v3  ;;  %650 = vmax.xlane.f32.xlu0 %v1923_v1  ;;  %v405_v9 = vpop.f32.mrf.mxu1  ;;  %v381_v11 = vpop.f32.mrf.mxu0  ;;  %v510_v2 = vld [vmem:[%s1895_s27 + $0x20] sm:$0xff]  ;;  %v509_v3 = vld [vmem:[%s1895_s27 + $0x18] sm:$0xff] }
  0xaa   : > { %v382_v12 = vadd.f32 %v1888_v38, %v381_v11  ;;  %v406_v30 = vadd.f32 %v1888_v38, %v405_v9 }
  0xab   : > { %v491_v13 = vsel %vm473_vm1, %v427_v6, -1e+30  ;;  %v499_v14 = vsel %vm473_vm1, %v451_v7, -1e+30 }
  0xac   : > { %v563_v17 = vadd.f32 %v531_v8, %v499_v14  ;;  %v555_v18 = vadd.f32 %v523_v10, %v491_v13  ;;  %v476_v19 = vsel %vm473_vm1, %v382_v12, -1e+30  ;;  %v484_v42 = vsel %vm473_vm1, %v406_v30, -1e+30  ;;  %v533_v8 = vld [vmem:[%s1895_s27 + $0xd8] sm:$0xff]  ;;  %v518_v30 = vld [vmem:[%s1895_s27 + $0x60] sm:$0xff] }
  0xad   : > { %v540_v27 = vadd.f32 %v508_v20, %v476_v19  ;;  %v548_v54 = vadd.f32 %v516_v45, %v484_v42  ;;  %v525_v19 = vld [vmem:[%s1895_s27 + $0x98] sm:$0xff] }
  0xae   : > { %v1943_v21 = vmul.f32 1.4285715, %v563_v17  ;;  %v1945_v22 = vmul.f32 1.4285715, %v555_v18 }
  0xaf   : > { %v1962_v41 = vmul.f32 1.4285715, %v540_v27  ;;  %v1985_v63 = vmul.f32 1.4285715, %v548_v54 }
  0xb0   : > { %v453_v25 = vpop.f32.mrf.mxu3  ;;  %652 = vmax.xlane.f32.xlu1 %v1943_v21  ;;  %636 = vmax.xlane.f32.xlu2 %v1945_v22  ;;  %v429_v26 = vpop.f32.mrf.mxu2 }
  0xb1   : > { %v454_v29 = vadd.f32 %v1888_v38, %v453_v25  ;;  %604 = vmax.xlane.f32.xlu0 %v1947_v23  ;;  %v408_v31 = vpop.f32.mrf.mxu1  ;;  %v384_v33 = vpop.f32.mrf.mxu0  ;;  %v430_v35 = vadd.f32 %v1888_v38, %v429_v26 }
  0xb2   : > { %v409_v34 = vadd.f32 %v1888_v38, %v408_v31  ;;  %v385_v56 = vadd.f32 %v1888_v38, %v384_v33 }
  0xb3   : > { %v500_v36 = vsel %vm473_vm1, %v454_v29, -1e+30  ;;  %v492_v46 = vsel %vm473_vm1, %v430_v35, -1e+30 }
  0xb4   : > { %v564_v40 = vadd.f32 %v532_v32, %v500_v36  ;;  %v485_v43 = vsel %vm473_vm1, %v409_v34, -1e+30  ;;  %v556_v58 = vadd.f32 %v524_v48, %v492_v46  ;;  %v477_v4 = vsel %vm473_vm1, %v385_v56, -1e+30 }
  0xb5   : > { %v549_v53 = vadd.f32 %v517_v44, %v485_v43  ;;  %v541_v12 = vadd.f32 %v509_v3, %v477_v4 }
  0xb6   : > { %v1972_v47 = vmul.f32 1.4285715, %v564_v40  ;;  %v1993_v6 = vmul.f32 1.4285715, %v556_v58  ;;  %v511_v58 = vld [vmem:[%s1895_s27 + $0x28] sm:$0xff] }
  0xb7   : > { %v1983_v62 = vmul.f32 1.4285715, %v549_v53  ;;  %v2009_v25 = vmul.f32 1.4285715, %v541_v12 }
  0xb8   : > { %654 = vmax.xlane.f32.xlu2 %v1972_v47  ;;  %606 = vmax.xlane.f32.xlu1 %v1962_v41  ;;  %v432_v52 = vpop.f32.mrf.mxu2  ;;  %v456_v55 = vpop.f32.mrf.mxu3 }
  0xb9   : > { %620 = vmax.xlane.f32.xlu0 %v1975_v51  ;;  %v387_v57 = vpop.f32.mrf.mxu0  ;;  %v411_v59 = vpop.f32.mrf.mxu1  ;;  %v457_v61 = vadd.f32 %v1888_v38, %v456_v55  ;;  %v433_v9 = vadd.f32 %v1888_v38, %v432_v52  ;;  %v534_v52 = vld [vmem:[%s1895_s27 + $0xe0] sm:$0xff] }
  0xba   : > { %v388_v60 = vadd.f32 %v1888_v38, %v387_v57  ;;  %v412_v18 = vadd.f32 %v1888_v38, %v411_v59 }
  0xbb   : > { %v501_v7 = vsel %vm473_vm1, %v457_v61, -1e+30  ;;  %v493_v20 = vsel %vm473_vm1, %v433_v9, -1e+30 }
  0xbc   : > { %v478_v5 = vsel %vm473_vm1, %v388_v60, -1e+30  ;;  %v565_v15 = vadd.f32 %v533_v8, %v501_v7  ;;  %v486_v29 = vsel %vm473_vm1, %v412_v18, -1e+30  ;;  %v557_v32 = vadd.f32 %v525_v19, %v493_v20  ;;  %v527_v60 = vld [vmem:[%s1895_s27 + $0xa8] sm:$0xff] }
  0xbd   : > { %v542_v11 = vadd.f32 %v510_v2, %v478_v5  ;;  %v550_v39 = vadd.f32 %v518_v30, %v486_v29  ;;  %v519_v18 = vld [vmem:[%s1895_s27 + $0x68] sm:$0xff] }
  0xbe   : > { %v2013_v27 = vmul.f32 1.4285715, %v565_v15  ;;  %v2029_v48 = vmul.f32 1.4285715, %v557_v32  ;;  %v512_v32 = vld [vmem:[%s1895_s27 + $0x30] sm:$0xff] }
  0xbf   : > { %v2007_v24 = vmul.f32 1.4285715, %v542_v11  ;;  %v2040_v57 = vmul.f32 1.4285715, %v550_v39 }
  0xc0   : > { %624 = vmax.xlane.f32.xlu2 %v1983_v62  ;;  %622 = vmax.xlane.f32.xlu1 %v1985_v63  ;;  %v435_v10 = vpop.f32.mrf.mxu2  ;;  %v459_v13 = vpop.f32.mrf.mxu3 }
  0xc1   : > { %638 = vmax.xlane.f32.xlu0 %v1993_v6  ;;  %v436_v14 = vadd.f32 %v1888_v38, %v435_v10  ;;  %v390_v16 = vpop.f32.mrf.mxu0  ;;  %v414_v17 = vpop.f32.mrf.mxu1  ;;  %v460_v31 = vadd.f32 %v1888_v38, %v459_v13 }
  0xc2   : > { %v391_v36 = vadd.f32 %v1888_v38, %v390_v16  ;;  %v415_v2 = vadd.f32 %v1888_v38, %v414_v17  ;;  %v535_v17 = vld [vmem:[%s1895_s27 + $0xe8] sm:$0xff] }
  0xc3   : > { %v494_v26 = vsel %vm473_vm1, %v436_v14, -1e+30  ;;  %v502_v46 = vsel %vm473_vm1, %v460_v31, -1e+30 }
  0xc4   : > { %v558_v33 = vadd.f32 %v526_v28, %v494_v26  ;;  %v479_v56 = vsel %vm473_vm1, %v391_v36, -1e+30  ;;  %v566_v61 = vadd.f32 %v534_v52, %v502_v46  ;;  %v487_v29 = vsel %vm473_vm1, %v415_v2, -1e+30 }
  0xc5   : > { %v543_v3 = vadd.f32 %v511_v58, %v479_v56  ;;  %v528_v56 = vld [vmem:[%s1895_s27 + $0xb0] sm:$0xff] }
  0xc6   : > { %v2032_v53 = vmul.f32 1.4285715, %v558_v33  ;;  %v2055_v15 = vmul.f32 1.4285715, %v566_v61  ;;  %v536_v58 = vld [vmem:[%s1895_s27 + $0xf0] sm:$0xff] }
  0xc7   : > { %v2063_v20 = vmul.f32 1.4285715, %v543_v3  ;;  %v529_v3 = vld [vmem:[%s1895_s27 + $0xb8] sm:$0xff] }
  0xc8   : > { %610 = vmax.xlane.f32.xlu2 %v2007_v24  ;;  %608 = vmax.xlane.f32.xlu1 %v2009_v25  ;;  %v438_v34 = vpop.f32.mrf.mxu2  ;;  %v462_v35 = vpop.f32.mrf.mxu3 }
  0xc9   : > { %656 = vmax.xlane.f32.xlu0 %v2013_v27  ;;  %v393_v40 = vpop.f32.mrf.mxu0  ;;  %v417_v42 = vpop.f32.mrf.mxu1  ;;  %v439_v43 = vadd.f32 %v1888_v38, %v438_v34  ;;  %v463_v7 = vadd.f32 %v1888_v38, %v462_v35  ;;  %v551_v34 = vadd.f32 %v519_v18, %v487_v29 }
  0xca   : > { %v394_v44 = vadd.f32 %v1888_v38, %v393_v40  ;;  %v418_v45 = vadd.f32 %v1888_v38, %v417_v42 }
  0xcb   : > { %v495_v59 = vsel %vm473_vm1, %v439_v43, -1e+30  ;;  %v503_v30 = vsel %vm473_vm1, %v463_v7, -1e+30  ;;  %v2087_v46 = vmul.f32 1.4285715, %v551_v34 }
  0xcc   : > { %v480_v54 = vsel %vm473_vm1, %v394_v44, -1e+30  ;;  %v488_v55 = vsel %vm473_vm1, %v418_v45, -1e+30  ;;  %v559_v8 = vadd.f32 %v527_v60, %v495_v59  ;;  %v567_v33 = vadd.f32 %v535_v17, %v503_v30 }
  0xcd   : > { %v544_v39 = vadd.f32 %v512_v32, %v480_v54  ;;  %v520_v54 = vld [vmem:[%s1895_s27 + $0x70] sm:$0xff] }
  0xce   : > { %v2073_v31 = vmul.f32 1.4285715, %v559_v8  ;;  %v2085_v45 = vmul.f32 1.4285715, %v567_v33 }
  0xcf   : > { %v2089_v52 = vmul.f32 1.4285715, %v544_v39 }
  0xd0   : > { %642 = vmax.xlane.f32.xlu2 %v2032_v53  ;;  %640 = vmax.xlane.f32.xlu1 %v2029_v48  ;;  %v441_v4 = vpop.f32.mrf.mxu2  ;;  %v465_v5 = vpop.f32.mrf.mxu3 }
  0xd1   : > { %626 = vmax.xlane.f32.xlu0 %v2040_v57  ;;  %v442_v9 = vadd.f32 %v1888_v38, %v441_v4  ;;  %v466_v10 = vadd.f32 %v1888_v38, %v465_v5  ;;  %v396_v11 = vpop.f32.mrf.mxu0  ;;  %v420_v12 = vpop.f32.mrf.mxu1  ;;  %v513_v4 = vld [vmem:[%s1895_s27 + $0x38] sm:$0xff] }
  0xd2   : > { %v397_v13 = vadd.f32 %v1888_v38, %v396_v11  ;;  %v421_v14 = vadd.f32 %v1888_v38, %v420_v12  ;;  %v521_v5 = vld [vmem:[%s1895_s27 + $0x78] sm:$0xff] }
  0xd3   : > { %v496_v16 = vsel %vm473_vm1, %v442_v9, -1e+30  ;;  %v504_v19 = vsel %vm473_vm1, %v466_v10, -1e+30  ;;  %v537_v12 = vld [vmem:[%s1895_s27 + $0xf8] sm:$0xff] }
  0xd4   : > { %v481_v26 = vsel %vm473_vm1, %v397_v13, -1e+30  ;;  %v489_v28 = vsel %vm473_vm1, %v421_v14, -1e+30  ;;  %v560_v59 = vadd.f32 %v528_v56, %v496_v16  ;;  %v568_v37 = vadd.f32 %v536_v58, %v504_v19 }
  0xd5   : > { %v553_v8 = vadd.f32 %v521_v5, %v489_v28 }
  0xd6   : > { %v2099_v61 = vmul.f32 1.4285715, %v560_v59  ;;  %v2101_v2 = vmul.f32 1.4285715, %v568_v37 }
  0xd7   : > { %v2113_v11 = vmul.f32 1.4285715, %v553_v8 }
  0xd8   : > { %612 = vmax.xlane.f32.xlu2 %v2063_v20  ;;  %658 = vmax.xlane.f32.xlu1 %v2055_v15  ;;  %v444_v35 = vpop.f32.mrf.mxu2  ;;  %v468_v36 = vpop.f32.mrf.mxu3 }
  0xd9   : > { %644 = vmax.xlane.f32.xlu0 %v2073_v31  ;;  %v445_v40 = vadd.f32 %v1888_v38, %v444_v35  ;;  %v469_v42 = vadd.f32 %v1888_v38, %v468_v36  ;;  %v552_v38 = vadd.f32 %v520_v54, %v488_v55  ;;  %v545_v55 = vadd.f32 %v513_v4, %v481_v26 }
  0xdb   : > { %v497_v43 = vsel %vm473_vm1, %v445_v40, -1e+30  ;;  %v505_v44 = vsel %vm473_vm1, %v469_v42, -1e+30  ;;  %v2097_v60 = vmul.f32 1.4285715, %v552_v38 }
  0xdc   : > { %v561_v7 = vadd.f32 %v529_v3, %v497_v43  ;;  %v2111_v10 = vmul.f32 1.4285715, %v545_v55  ;;  %v569_v13 = vadd.f32 %v537_v12, %v505_v44 }
  0xde   : > { %v2109_v9 = vmul.f32 1.4285715, %v561_v7  ;;  %v2119_v14 = vmul.f32 1.4285715, %v569_v13 }
  0xe0   : > { %660 = vmax.xlane.f32.xlu2 %v2085_v45  ;;  %628 = vmax.xlane.f32.xlu1 %v2087_v46 }
  0xe1   : > { %614 = vmax.xlane.f32.xlu0 %v2089_v52 }
  0xe8   : > { %630 = vmax.xlane.f32.xlu2 %v2097_v60  ;;  %646 = vmax.xlane.f32.xlu1 %v2099_v61 }
  0xe9   : > { %662 = vmax.xlane.f32.xlu0 %v2101_v2 }
  0xf0   : > { %648 = vmax.xlane.f32.xlu2 %v2109_v9  ;;  %616 = vmax.xlane.f32.xlu1 %v2111_v10 }
  0xf1   : > { %632 = vmax.xlane.f32.xlu0 %v2113_v11 }
  0xf8   : > { %664 = vmax.xlane.f32.xlu1 %v2119_v14 }
 0x114   : > { %v619_v16 = vpop.xlane.xlu2 %618  ;;  %v603_v17 = vpop.xlane.xlu0 %602 }
 0x115   : > { %v674_v18 = vsub.f32 %v1906_v49, %v619_v16  ;;  %v666_v19 = vsub.f32 %v1908_v50, %v603_v17 }
 0x117   : > { %v714_v26 = vmul.f32 1.442695, %v674_v18  ;;  %v698_v28 = vmul.f32 1.442695, %v666_v19 }
 0x119   : > { %1529 = vpow2.f32 %v714_v26 }
 0x11a   : > { %1531 = vpow2.f32 %v698_v28 }
 0x11b   : > { %v635_v29 = vpop.xlane.xlu1 %634 }
 0x11c   : > { %v682_v30 = vsub.f32 %v1921_v0, %v635_v29  ;;  %v651_v32 = vpop.xlane.xlu0 %650 }
 0x11d   : > { %v690_v33 = vsub.f32 %v1923_v1, %v651_v32 }
 0x11e   : > { %v730_v34 = vmul.f32 1.442695, %v682_v30 }
 0x11f   : > { %v2126_v35 = vpop.eup %1529  ;;  %v746_v36 = vmul.f32 1.442695, %v690_v33 }
 0x120   : > { %v2128_v39 = vpop.eup %1531  ;;  %1533 = vpow2.f32 %v730_v34  ;;  %778 = vadd.xlane.f32.xlu1 %v2126_v35 }
 0x121   : > { %1535 = vpow2.f32 %v746_v36  ;;  %762 = vadd.xlane.f32.xlu2 %v2128_v39 }
 0x123   : > { %v653_v49 = vpop.xlane.xlu1 %652  ;;  %v637_v50 = vpop.xlane.xlu2 %636 }
 0x124   : > { %v683_v40 = vsub.f32 %v1945_v22, %v637_v50  ;;  %v605_v0 = vpop.xlane.xlu0 %604  ;;  %v691_v56 = vsub.f32 %v1943_v21, %v653_v49 }
 0x125   : > { %v667_v42 = vsub.f32 %v1947_v23, %v605_v0 }
 0x126   : > { %v2134_v1 = vpop.eup %1533  ;;  %v732_v43 = vmul.f32 1.442695, %v683_v40  ;;  %v748_v22 = vmul.f32 1.442695, %v691_v56 }
 0x127   : > { %v2136_v44 = vpop.eup %1535  ;;  %v700_v54 = vmul.f32 1.442695, %v667_v42  ;;  %794 = vadd.xlane.f32.xlu0 %v2134_v1 }
 0x128   : > { %1537 = vpow2.f32 %v732_v43 }
 0x129   : > { %810 = vadd.xlane.f32.xlu2 %v2136_v44  ;;  %1539 = vpow2.f32 %v700_v54 }
 0x12a   : > { %1541 = vpow2.f32 %v748_v22 }
 0x12b   : > { %v655_v58 = vpop.xlane.xlu2 %654  ;;  %v607_v38 = vpop.xlane.xlu1 %606 }
 0x12c   : > { %v668_v59 = vsub.f32 %v1962_v41, %v607_v38  ;;  %v621_v23 = vpop.xlane.xlu0 %620  ;;  %v692_v21 = vsub.f32 %v1972_v47, %v655_v58 }
 0x12d   : > { %v675_v37 = vsub.f32 %v1975_v51, %v621_v23 }
 0x12e   : > { %v702_v3 = vmul.f32 1.442695, %v668_v59  ;;  %v2143_v4 = vpop.eup %1537  ;;  %v750_v8 = vmul.f32 1.442695, %v692_v21 }
 0x12f   : > { %v716_v5 = vmul.f32 1.442695, %v675_v37  ;;  %v2145_v7 = vpop.eup %1539  ;;  %796 = vadd.xlane.f32.xlu1 %v2143_v4 }
 0x130   : > { %1543 = vpow2.f32 %v702_v3  ;;  %764 = vadd.xlane.f32.xlu0 %v2145_v7  ;;  %v2152_v16 = vpop.eup %1541 }
 0x131   : > { %1545 = vpow2.f32 %v716_v5 }
 0x132   : > { %1547 = vpow2.f32 %v750_v8 }
 0x133   : > { %v625_v55 = vpop.xlane.xlu2 %624  ;;  %v623_v41 = vpop.xlane.xlu1 %622 }
 0x134   : > { %v676_v51 = vsub.f32 %v1985_v63, %v623_v41  ;;  %v639_v12 = vpop.xlane.xlu0 %638  ;;  %v677_v26 = vsub.f32 %v1983_v62, %v625_v55 }
 0x135   : > { %v684_v13 = vsub.f32 %v1993_v6, %v639_v12 }
 0x136   : > { %v718_v17 = vmul.f32 1.442695, %v676_v51  ;;  %v2154_v18 = vpop.eup %1543  ;;  %v720_v30 = vmul.f32 1.442695, %v677_v26 }
 0x137   : > { %v734_v47 = vmul.f32 1.442695, %v684_v13  ;;  %v2156_v19 = vpop.eup %1545  ;;  %766 = vadd.xlane.f32.xlu1 %v2154_v18 }
 0x138   : > { %1549 = vpow2.f32 %v718_v17  ;;  %812 = vadd.xlane.f32.xlu0 %v2152_v16  ;;  %780 = vadd.xlane.f32.xlu2 %v2156_v19  ;;  %v2163_v32 = vpop.eup %1547 }
 0x139   : > { %1551 = vpow2.f32 %v734_v47 }
 0x13a   : > { %1553 = vpow2.f32 %v720_v30 }
 0x13b   : > { %v611_v63 = vpop.xlane.xlu2 %610  ;;  %v609_v6 = vpop.xlane.xlu1 %608 }
 0x13c   : > { %v669_v28 = vsub.f32 %v2009_v25, %v609_v6  ;;  %v657_v29 = vpop.xlane.xlu0 %656  ;;  %v670_v38 = vsub.f32 %v2007_v24, %v611_v63 }
 0x13d   : > { %v693_v62 = vsub.f32 %v2013_v27, %v657_v29 }
 0x13e   : > { %v704_v33 = vmul.f32 1.442695, %v669_v28  ;;  %v2165_v34 = vpop.eup %1549  ;;  %v706_v23 = vmul.f32 1.442695, %v670_v38 }
 0x13f   : > { %v2167_v36 = vpop.eup %1551  ;;  %814 = vadd.xlane.f32.xlu1 %v2163_v32  ;;  %v752_v42 = vmul.f32 1.442695, %v693_v62 }
 0x140   : > { %782 = vadd.xlane.f32.xlu0 %v2165_v34  ;;  %798 = vadd.xlane.f32.xlu2 %v2167_v36  ;;  %1555 = vpow2.f32 %v704_v33  ;;  %v2175_v56 = vpop.eup %1553 }
 0x143   : > { %v643_v25 = vpop.xlane.xlu2 %642  ;;  %v641_v49 = vpop.xlane.xlu1 %640 }
 0x144   : > { %v686_v50 = vsub.f32 %v2032_v53, %v643_v25  ;;  %v685_v40 = vsub.f32 %v2029_v48, %v641_v49  ;;  %v627_v0 = vpop.xlane.xlu0 %626 }
 0x145   : > { %v678_v27 = vsub.f32 %v2040_v57, %v627_v0 }
 0x146   : > { %v738_v43 = vmul.f32 1.442695, %v686_v50  ;;  %v736_v54 = vmul.f32 1.442695, %v685_v40  ;;  %v2177_v58 = vpop.eup %1555 }
 0x147   : > { %784 = vadd.xlane.f32.xlu1 %v2175_v56  ;;  %v722_v3 = vmul.f32 1.442695, %v678_v27 }
 0x148   : > { %1557 = vpow2.f32 %v738_v43  ;;  %768 = vadd.xlane.f32.xlu2 %v2177_v58 }
 0x149   : > { %1559 = vpow2.f32 %v736_v54 }
 0x14a   : > { %1561 = vpow2.f32 %v752_v42 }
 0x14b   : > { %v613_v48 = vpop.xlane.xlu2 %612  ;;  %v659_v53 = vpop.xlane.xlu1 %658 }
 0x14c   : > { %v671_v22 = vsub.f32 %v2063_v20, %v613_v48  ;;  %v645_v59 = vpop.xlane.xlu0 %644  ;;  %v694_v24 = vsub.f32 %v2055_v15, %v659_v53 }
 0x14d   : > { %v687_v57 = vsub.f32 %v2073_v31, %v645_v59 }
 0x14e   : > { %v2184_v37 = vpop.eup %1557  ;;  %v708_v5 = vmul.f32 1.442695, %v671_v22  ;;  %v754_v51 = vmul.f32 1.442695, %v694_v24 }
 0x14f   : > { %v2186_v21 = vpop.eup %1559  ;;  %802 = vadd.xlane.f32.xlu1 %v2184_v37  ;;  %v740_v13 = vmul.f32 1.442695, %v687_v57 }
 0x150   : > { %v2188_v55 = vpop.eup %1561  ;;  %1563 = vpow2.f32 %v708_v5  ;;  %800 = vadd.xlane.f32.xlu0 %v2186_v21 }
 0x151   : > { %1565 = vpow2.f32 %v706_v23  ;;  %816 = vadd.xlane.f32.xlu2 %v2188_v55 }
 0x152   : > { %1567 = vpow2.f32 %v722_v3 }
 0x153   : > { %v661_v20 = vpop.xlane.xlu2 %660  ;;  %v629_v41 = vpop.xlane.xlu1 %628  ;;  %1569 = vpow2.f32 %v754_v51 }
 0x154   : > { %v615_v8 = vpop.xlane.xlu0 %614  ;;  %v679_v15 = vsub.f32 %v2087_v46, %v629_v41  ;;  %1571 = vpow2.f32 %v740_v13  ;;  %v695_v27 = vsub.f32 %v2085_v45, %v661_v20 }
 0x155   : > { %v672_v31 = vsub.f32 %v2089_v52, %v615_v8 }
 0x156   : > { %v2195_v12 = vpop.eup %1563  ;;  %v724_v29 = vmul.f32 1.442695, %v679_v15  ;;  %v756_v48 = vmul.f32 1.442695, %v695_v27 }
 0x157   : > { %v2197_v17 = vpop.eup %1565  ;;  %772 = vadd.xlane.f32.xlu1 %v2195_v12  ;;  %v710_v30 = vmul.f32 1.442695, %v672_v31 }
 0x158   : > { %v2199_v47 = vpop.eup %1567  ;;  %770 = vadd.xlane.f32.xlu0 %v2197_v17 }
 0x159   : > { %786 = vadd.xlane.f32.xlu2 %v2199_v47  ;;  %v2207_v62 = vpop.eup %1569 }
 0x15a   : > { %v2209_v25 = vpop.eup %1571 }
 0x15b   : > { %v631_v26 = vpop.xlane.xlu2 %630  ;;  %v647_v63 = vpop.xlane.xlu1 %646 }
 0x15c   : > { %v680_v6 = vsub.f32 %v2097_v60, %v631_v26  ;;  %v663_v28 = vpop.xlane.xlu0 %662  ;;  %v688_v46 = vsub.f32 %v2099_v61, %v647_v63 }
 0x15e   : > { %v726_v33 = vmul.f32 1.442695, %v680_v6  ;;  %v742_v40 = vmul.f32 1.442695, %v688_v46 }
 0x160   : > { %1573 = vpow2.f32 %v726_v33  ;;  %818 = vadd.xlane.f32.xlu0 %v2207_v62 }
 0x161   : > { %1575 = vpow2.f32 %v724_v29  ;;  %804 = vadd.xlane.f32.xlu2 %v2209_v25 }
 0x162   : > { %1577 = vpow2.f32 %v710_v30 }
 0x163   : > { %v649_v52 = vpop.xlane.xlu2 %648  ;;  %v617_v49 = vpop.xlane.xlu1 %616 }
 0x164   : > { %v689_v60 = vsub.f32 %v2109_v9, %v649_v52  ;;  %v633_v50 = vpop.xlane.xlu0 %632  ;;  %v673_v9 = vsub.f32 %v2111_v10, %v617_v49 }
 0x165   : > { %v681_v0 = vsub.f32 %v2113_v11, %v633_v50  ;;  %v696_v11 = vsub.f32 %v2101_v2, %v663_v28 }
 0x166   : > { %v2216_v42 = vpop.eup %1573  ;;  %v744_v43 = vmul.f32 1.442695, %v689_v60  ;;  %v712_v53 = vmul.f32 1.442695, %v673_v9 }
 0x167   : > { %v2218_v54 = vpop.eup %1575  ;;  %v728_v38 = vmul.f32 1.442695, %v681_v0  ;;  %790 = vadd.xlane.f32.xlu1 %v2216_v42  ;;  %v758_v59 = vmul.f32 1.442695, %v696_v11 }
 0x168   : > { %v2221_v61 = vpop.eup %1577  ;;  %1579 = vpow2.f32 %v744_v43  ;;  %788 = vadd.xlane.f32.xlu0 %v2218_v54 }
 0x169   : > { %1581 = vpow2.f32 %v742_v40  ;;  %774 = vadd.xlane.f32.xlu2 %v2221_v61 }
 0x16a   : > { %1583 = vpow2.f32 %v728_v38 }
 0x16b   : > { %v665_v23 = vpop.xlane.xlu1 %664  ;;  %1585 = vpow2.f32 %v756_v48 }
 0x16c   : > { %1587 = vpow2.f32 %v712_v53  ;;  %v697_v10 = vsub.f32 %v2119_v14, %v665_v23 }
 0x16d   : > { %1589 = vpow2.f32 %v758_v59 }
 0x16e   : > { %v2228_v22 = vpop.eup %1579  ;;  %v760_v2 = vmul.f32 1.442695, %v697_v10 }
 0x16f   : > { %v2230_v3 = vpop.eup %1581  ;;  %808 = vadd.xlane.f32.xlu1 %v2228_v22 }
 0x170   : > { %v2233_v45 = vpop.eup %1583  ;;  %806 = vadd.xlane.f32.xlu0 %v2230_v3  ;;  %1591 = vpow2.f32 %v760_v2 }
 0x171   : > { %792 = vadd.xlane.f32.xlu2 %v2233_v45  ;;  %v2238_v5 = vpop.eup %1585 }
 0x172   : > { %v2240_v24 = vpop.eup %1587 }
 0x173   : > { %v2243_v57 = vpop.eup %1589 }
 0x176   : > { %v2247_v20 = vpop.eup %1591 }
 0x177   : > { %820 = vadd.xlane.f32.xlu1 %v2238_v5 }
 0x178   : > { %776 = vadd.xlane.f32.xlu0 %v2240_v24 }
 0x179   : > { %822 = vadd.xlane.f32.xlu2 %v2243_v57 }
 0x180   : > { %824 = vadd.xlane.f32.xlu0 %v2247_v20 }
 0x193   : > { %v779_v14 = vpop.xlane.xlu1 %778 }
 0x194   : > { %1593 = vrcp.f32 %v779_v14  ;;  %v763_v41 = vpop.xlane.xlu2 %762  ;;  %v955_v6 = vand.u32 2147483647, %v779_v14  ;;  %v957_v28 = vand.u32 2147483648, %v779_v14  ;;  %vm951_vm4 = vweird.f32 %v779_v14 }
 0x195   : > { %1595 = vrcp.f32 %v763_v41  ;;  %v835_v33 = vand.u32 2147483647, %v763_v41  ;;  %v837_v46 = vand.u32 2147483648, %v763_v41  ;;  %vm831_vm5 = vweird.f32 %v763_v41 }
 0x196   : > { %vm956_vm7 = vcmp.eq.f32.partialorder %v955_v6, 8.507059e+37  ;;  %v958_v50 = vor.u32 1.1754944e-38, %v957_v28 }
 0x197   : > { %vm836_vm9 = vcmp.eq.f32.partialorder %v835_v33, 8.507059e+37  ;;  %v838_v27 = vor.u32 1.1754944e-38, %v837_v46 }
 0x19a   : > { %v1594_v8 = vpop.eup %1593  ;;  %v795_v51 = vpop.xlane.xlu0 %794 }
 0x19b   : > { %v1596_v13 = vpop.eup %1595  ;;  %v947_v15 = vmul.f32 %v1594_v8, %v779_v14  ;;  %1597 = vrcp.f32 %v795_v51  ;;  %vm952_vm2 = vweird.f32 %v1594_v8  ;;  %v1075_v9 = vand.u32 2147483647, %v795_v51 }
 0x19c   : > { %v827_v31 = vmul.f32 %v1596_v13, %v763_v41  ;;  %v2250_v26 = vpop.xlane.xlu2 %810  ;;  %vm832_vm3 = vweird.f32 %v1596_v13  ;;  %vm953_vm6 = vmor %vm951_vm4, %vm952_vm2  ;;  %v1077_v41 = vand.u32 2147483648, %v795_v51  ;;  %vm1071_vm11 = vweird.f32 %v795_v51 }
 0x19d   : > { %v948_v63 = vsub.f32 1.0, %v947_v15  ;;  %1599 = vrcp.f32 %v2250_v26  ;;  %vm833_vm8 = vmor %vm831_vm5, %vm832_vm3  ;;  %v1195_v6 = vand.u32 2147483647, %v2250_v26  ;;  %vm1076_vm14 = vcmp.eq.f32.partialorder %v1075_v9, 8.507059e+37 }
 0x19e   : > { %v828_v29 = vsub.f32 1.0, %v827_v31  ;;  %vm1191_vm15 = vweird.f32 %v2250_v26 }
 0x19f   : > { %v949_v30 = vmul.f32 %v1594_v8, %v948_v63  ;;  %vm1196_vm1 = vcmp.eq.f32.partialorder %v1195_v6, 8.507059e+37 }
 0x1a0   : > { %v829_v52 = vmul.f32 %v1596_v13, %v828_v29 }
 0x1a1   : > { %v1598_v60 = vpop.eup %1597  ;;  %v950_v49 = vadd.f32 %v1594_v8, %v949_v30 }
 0x1a2   : > { %v830_v40 = vadd.f32 %v1596_v13, %v829_v52  ;;  %v1067_v0 = vmul.f32 %v1598_v60, %v795_v51  ;;  %v2256_v11 = vpop.xlane.xlu1 %796  ;;  %vm1072_vm10 = vweird.f32 %v1598_v60 }
 0x1a3   : > { %v1600_v43 = vpop.eup %1599  ;;  %v954_v38 = vsel %vm953_vm6, %v1594_v8, %v950_v49  ;;  %v2259_v10 = vpop.xlane.xlu0 %764  ;;  %1601 = vrcp.f32 %v2256_v11  ;;  %vm1073_vm13 = vmor %vm1071_vm11, %vm1072_vm10  ;;  %v1092_v9 = vand.u32 2147483648, %v2256_v11  ;;  %vm1086_vm3 = vweird.f32 %v2256_v11 }
 0x1a4   : > { %v959_v48 = vsel %vm956_vm7, %v958_v50, %v954_v38  ;;  %v834_v53 = vsel %vm833_vm8, %v1596_v13, %v830_v40  ;;  %v1068_v59 = vsub.f32 1.0, %v1067_v0  ;;  %v1187_v23 = vmul.f32 %v1600_v43, %v2250_v26 }
 0x1a5   : > { %v960_v2 = vmul.f32 %v2126_v35, %v959_v48  ;;  %v839_v14 = vsel %vm836_vm9, %v838_v27, %v834_v53  ;;  %v1197_v13 = vand.u32 2147483648, %v2250_v26  ;;  %1603 = vrcp.f32 %v2259_v10 }
 0x1a6   : > { %v840_v8 = vmul.f32 %v2128_v39, %v839_v14  ;;  %v1069_v15 = vmul.f32 %v1598_v60, %v1068_v59  ;;  %v1188_v31 = vsub.f32 1.0, %v1187_v23  ;;  %vm1192_vm12 = vweird.f32 %v1600_v43 }
 0x1a7   : > { %1314 = vst [vmem:[%s2264_s30 + $0x40] sm:$0xff] %v960_v2  ;;  %v1078_v39 = vor.u32 1.1754944e-38, %v1077_v41  ;;  %vm1193_vm0 = vmor %vm1191_vm15, %vm1192_vm12  ;;  %v1198_v33 = vor.u32 1.1754944e-38, %v1197_v13  ;;  %v1090_v38 = vand.u32 2147483647, %v2256_v11  ;;  %v852_v53 = vand.u32 2147483648, %v2259_v10 }
 0x1a8   : > { %1306 = vst [vmem:[%s2264_s30] sm:$0xff] %v840_v8  ;;  %v1070_v35 = vadd.f32 %v1598_v60, %v1069_v15  ;;  %v1189_v63 = vmul.f32 %v1600_v43, %v1188_v31  ;;  %v850_v48 = vand.u32 2147483647, %v2259_v10  ;;  %vm846_vm5 = vweird.f32 %v2259_v10 }
 0x1a9   : > { %v1602_v30 = vpop.eup %1601  ;;  %vm2292_vm4 = vcmp.eq.f32.partialorder %v1090_v38, 8.507059e+37  ;;  %v1093_v41 = vor.u32 1.1754944e-38, %v1092_v9  ;;  %v853_v13 = vor.u32 1.1754944e-38, %v852_v53 }
 0x1aa   : > { %v1074_v28 = vsel %vm1073_vm13, %v1598_v60, %v1070_v35  ;;  %v1190_v29 = vadd.f32 %v1600_v43, %v1189_v63  ;;  %v2272_v46 = vpop.xlane.xlu1 %766  ;;  %v1082_v50 = vmul.f32 %v1602_v30, %v2256_v11  ;;  %vm1087_vm2 = vweird.f32 %v1602_v30 }
 0x1ab   : > { %v1079_v51 = vsel %vm1076_vm14, %v1078_v39, %v1074_v28  ;;  %v2276_v40 = vpop.xlane.xlu2 %780  ;;  %v1604_v60 = vpop.eup %1603  ;;  %1605 = vrcp.f32 %v2272_v46  ;;  %v865_v2 = vand.u32 2147483647, %v2272_v46  ;;  %vm1088_vm7 = vmor %vm1086_vm3, %vm1087_vm2  ;;  %vm2298_vm8 = vcmp.eq.f32.partialorder %v850_v48, 8.507059e+37 }
 0x1ac   : > { %v1080_v52 = vmul.f32 %v2134_v1, %v1079_v51  ;;  %v1194_v49 = vsel %vm1193_vm0, %v1600_v43, %v1190_v29  ;;  %v1083_v27 = vsub.f32 1.0, %v1082_v50  ;;  %v842_v1 = vmul.f32 %v1604_v60, %v2259_v10  ;;  %v2284_v43 = vpop.xlane.xlu0 %812 }
 0x1ad   : > { %v1199_v0 = vsel %vm1196_vm1, %v1198_v33, %v1194_v49  ;;  %1607 = vrcp.f32 %v2276_v40  ;;  %vm847_vm6 = vweird.f32 %v1604_v60  ;;  %vm861_vm9 = vweird.f32 %v2272_v46 }
 0x1ae   : > { %1322 = vst [vmem:[%s2264_s30 + $0x80] sm:$0xff] %v1080_v52  ;;  %v1200_v26 = vmul.f32 %v2136_v44, %v1199_v0  ;;  %v1084_v59 = vmul.f32 %v1602_v30, %v1083_v27  ;;  %v843_v23 = vsub.f32 1.0, %v842_v1  ;;  %1609 = vrcp.f32 %v2284_v43  ;;  %vm848_vm12 = vmor %vm846_vm5, %vm847_vm6 }
 0x1af   : > { %v867_v11 = vand.u32 2147483648, %v2272_v46  ;;  %vm2307_vm10 = vcmp.eq.f32.partialorder %v865_v2, 8.507059e+37  ;;  %vm966_vm11 = vweird.f32 %v2276_v40  ;;  %v972_v52 = vand.u32 2147483648, %v2276_v40 }
 0x1b0   : > { %1330 = vst [vmem:[%s2264_s30 + $0xc0] sm:$0xff] %v1200_v26  ;;  %v1085_v14 = vadd.f32 %v1602_v30, %v1084_v59  ;;  %v844_v8 = vmul.f32 %v1604_v60, %v843_v23  ;;  %v1210_v9 = vand.u32 2147483647, %v2284_v43  ;;  %vm1206_vm15 = vweird.f32 %v2284_v43 }
 0x1b1   : > { %v1606_v15 = vpop.eup %1605  ;;  %v868_v10 = vor.u32 1.1754944e-38, %v867_v11  ;;  %v1212_v23 = vand.u32 2147483648, %v2284_v43 }
 0x1b2   : > { %v2304_v35 = vpop.xlane.xlu1 %814  ;;  %v1089_v63 = vsel %vm1088_vm7, %v1602_v30, %v1085_v14  ;;  %v845_v6 = vadd.f32 %v1604_v60, %v844_v8  ;;  %v857_v39 = vmul.f32 %v1606_v15, %v2272_v46  ;;  %v970_v30 = vand.u32 2147483647, %v2276_v40 }
 0x1b3   : > { %v2312_v29 = vpop.xlane.xlu2 %798  ;;  %v1608_v51 = vpop.eup %1607  ;;  %v1094_v33 = vsel %vm2292_vm4, %v1093_v41, %v1089_v63  ;;  %1611 = vrcp.f32 %v2304_v35  ;;  %vm862_vm13 = vweird.f32 %v1606_v15  ;;  %v973_v41 = vor.u32 1.1754944e-38, %v972_v52 }
 0x1b4   : > { %v1095_v49 = vmul.f32 %v2143_v4, %v1094_v33  ;;  %v849_v50 = vsel %vm848_vm12, %v1604_v60, %v845_v6  ;;  %v858_v0 = vsub.f32 1.0, %v857_v39  ;;  %v962_v38 = vmul.f32 %v1608_v51, %v2276_v40  ;;  %v1610_v26 = vpop.eup %1609  ;;  %v2330_v60 = vpop.xlane.xlu0 %782  ;;  %vm863_vm1 = vmor %vm861_vm9, %vm862_vm13 }
 0x1b5   : > { %v854_v27 = vsel %vm2298_vm8, %v853_v13, %v849_v50  ;;  %v1202_v4 = vmul.f32 %v1610_v26, %v2284_v43  ;;  %vm2332_vm14 = vcmp.eq.f32.partialorder %v970_v30, 8.507059e+37  ;;  %1613 = vrcp.f32 %v2312_v29 }
 0x1b6   : > { %1323 = vst [vmem:[%s2264_s30 + $0x88] sm:$0xff] %v1095_v49  ;;  %v855_v1 = vmul.f32 %v2145_v7, %v854_v27  ;;  %v859_v48 = vmul.f32 %v1606_v15, %v858_v0  ;;  %v963_v53 = vsub.f32 1.0, %v962_v38  ;;  %vm967_vm0 = vweird.f32 %v1608_v51 }
 0x1b7   : > { %v1203_v7 = vsub.f32 1.0, %v1202_v4  ;;  %vm1207_vm2 = vweird.f32 %v1610_v26  ;;  %vm2343_vm3 = vcmp.eq.f32.partialorder %v1210_v9, 8.507059e+37  ;;  %1615 = vrcp.f32 %v2330_v60  ;;  %vm968_vm4 = vmor %vm966_vm11, %vm967_vm0 }
 0x1b8   : > { %1307 = vst [vmem:[%s2264_s30 + $0x8] sm:$0xff] %v855_v1  ;;  %v860_v2 = vadd.f32 %v1606_v15, %v859_v48  ;;  %v964_v44 = vmul.f32 %v1608_v51, %v963_v53  ;;  %v1213_v46 = vor.u32 1.1754944e-38, %v1212_v23  ;;  %v1225_v33 = vand.u32 2147483647, %v2304_v35  ;;  %vm1208_vm5 = vmor %vm1206_vm15, %vm1207_vm2 }
 0x1b9   : > { %v1612_v14 = vpop.eup %1611  ;;  %v1204_v63 = vmul.f32 %v1610_v26, %v1203_v7  ;;  %v1227_v30 = vand.u32 2147483648, %v2304_v35  ;;  %vm1221_vm6 = vweird.f32 %v2304_v35  ;;  %vm1101_vm9 = vweird.f32 %v2312_v29 }
 0x1ba   : > { %v2348_v31 = vpop.xlane.xlu1 %784  ;;  %v864_v13 = vsel %vm863_vm1, %v1606_v15, %v860_v2  ;;  %v965_v11 = vadd.f32 %v1608_v51, %v964_v44  ;;  %v1217_v6 = vmul.f32 %v1612_v14, %v2304_v35  ;;  %vm1222_vm7 = vweird.f32 %v1612_v14 }
 0x1bb   : > { %v869_v39 = vsel %vm2307_vm10, %v868_v10, %v864_v13  ;;  %v1205_v15 = vadd.f32 %v1610_v26, %v1204_v63  ;;  %v2358_v0 = vpop.xlane.xlu2 %768  ;;  %v1614_v38 = vpop.eup %1613  ;;  %1617 = vrcp.f32 %v2348_v31  ;;  %vm2372_vm8 = vcmp.eq.f32.partialorder %v1225_v33, 8.507059e+37  ;;  %vm1223_vm10 = vmor %vm1221_vm6, %vm1222_vm7 }
 0x1bc   : > { %v870_v52 = vmul.f32 %v2154_v18, %v869_v39  ;;  %v969_v49 = vsel %vm968_vm4, %v1608_v51, %v965_v11  ;;  %v1218_v50 = vsub.f32 1.0, %v1217_v6  ;;  %v1097_v27 = vmul.f32 %v1614_v38, %v2312_v29 }
 0x1bd   : > { %v974_v28 = vsel %vm2332_vm14, %v973_v41, %v969_v49  ;;  %v1209_v40 = vsel %vm1208_vm5, %v1610_v26, %v1205_v15  ;;  %v1616_v10 = vpop.eup %1615  ;;  %v1228_v1 = vor.u32 1.1754944e-38, %v1227_v30  ;;  %vm1102_vm11 = vweird.f32 %v1614_v38 }
 0x1be   : > { %1308 = vst [vmem:[%s2264_s30 + $0x10] sm:$0xff] %v870_v52  ;;  %v975_v18 = vmul.f32 %v2156_v19, %v974_v28  ;;  %v1219_v51 = vmul.f32 %v1612_v14, %v1218_v50  ;;  %v1214_v9 = vsel %vm2343_vm3, %v1213_v46, %v1209_v40  ;;  %v1098_v26 = vsub.f32 1.0, %v1097_v27  ;;  %vm1103_vm14 = vmor %vm1101_vm9, %vm1102_vm11 }
 0x1bf   : > { %v1215_v48 = vmul.f32 %v2152_v16, %v1214_v9  ;;  %v977_v53 = vmul.f32 %v1616_v10, %v2330_v60  ;;  %v1105_v4 = vand.u32 2147483647, %v2312_v29  ;;  %v1107_v59 = vand.u32 2147483648, %v2312_v29 }
 0x1c0   : > { %1315 = vst [vmem:[%s2264_s30 + $0x48] sm:$0xff] %v975_v18  ;;  %v1220_v19 = vadd.f32 %v1612_v14, %v1219_v51  ;;  %vm981_vm12 = vweird.f32 %v2330_v60  ;;  %v1099_v2 = vmul.f32 %v1614_v38, %v1098_v26  ;;  %1619 = vrcp.f32 %v2358_v0 }
 0x1c1   : > { %1331 = vst [vmem:[%s2264_s30 + $0xc8] sm:$0xff] %v1215_v48  ;;  %v978_v44 = vsub.f32 1.0, %v977_v53  ;;  %v1618_v35 = vpop.eup %1617  ;;  %vm982_vm13 = vweird.f32 %v1616_v10  ;;  %v985_v8 = vand.u32 2147483647, %v2330_v60  ;;  %v987_v13 = vand.u32 2147483648, %v2330_v60 }
 0x1c2   : > { %v1224_v23 = vsel %vm1223_vm10, %v1612_v14, %v1220_v19  ;;  %v2388_v16 = vpop.xlane.xlu1 %802  ;;  %v1100_v11 = vadd.f32 %v1614_v38, %v1099_v2  ;;  %v992_v6 = vmul.f32 %v1618_v35, %v2348_v31  ;;  %vm1106_vm15 = vcmp.eq.f32.partialorder %v1105_v4, 8.507059e+37  ;;  %vm983_vm0 = vmor %vm981_vm12, %vm982_vm13 }
 0x1c3   : > { %v2390_v7 = vpop.xlane.xlu0 %800  ;;  %v1229_v41 = vsel %vm2372_vm8, %v1228_v1, %v1224_v23  ;;  %v979_v63 = vmul.f32 %v1616_v10, %v978_v44  ;;  %v1108_v39 = vor.u32 1.1754944e-38, %v1107_v59  ;;  %v1000_v46 = vand.u32 2147483647, %v2348_v31 }
 0x1c4   : > { %v1230_v14 = vmul.f32 %v2163_v32, %v1229_v41  ;;  %1621 = vrcp.f32 %v2388_v16  ;;  %v1104_v33 = vsel %vm1103_vm14, %v1614_v38, %v1100_v11  ;;  %v993_v52 = vsub.f32 1.0, %v992_v6  ;;  %v2405_v49 = vpop.xlane.xlu2 %816 }
 0x1c5   : > { %v980_v30 = vadd.f32 %v1616_v10, %v979_v63  ;;  %v1002_v32 = vand.u32 2147483648, %v2348_v31  ;;  %v1109_v15 = vsel %vm1106_vm15, %v1108_v39, %v1104_v33  ;;  %vm986_vm1 = vcmp.eq.f32.partialorder %v985_v8, 8.507059e+37 }
 0x1c6   : > { %1332 = vst [vmem:[%s2264_s30 + $0xd0] sm:$0xff] %v1230_v14  ;;  %v988_v29 = vor.u32 1.1754944e-38, %v987_v13  ;;  %v1620_v50 = vpop.eup %1619  ;;  %v1110_v28 = vmul.f32 %v2167_v36, %v1109_v15  ;;  %v994_v40 = vmul.f32 %v1618_v35, %v993_v52  ;;  %vm997_vm2 = vweird.f32 %v1618_v35 }
 0x1c7   : > { %v984_v18 = vsel %vm983_vm0, %v1616_v10, %v980_v30  ;;  %vm996_vm3 = vweird.f32 %v2348_v31  ;;  %vm2412_vm4 = vcmp.eq.f32.partialorder %v1000_v46, 8.507059e+37  ;;  %v872_v27 = vmul.f32 %v1620_v50, %v2358_v0 }
 0x1c8   : > { %v989_v38 = vsel %vm986_vm1, %v988_v29, %v984_v18  ;;  %1324 = vst [vmem:[%s2264_s30 + $0x90] sm:$0xff] %v1110_v28  ;;  %v995_v9 = vadd.f32 %v1618_v35, %v994_v40  ;;  %v1003_v43 = vor.u32 1.1754944e-38, %v1002_v32  ;;  %1623 = vrcp.f32 %v2390_v7  ;;  %vm998_vm5 = vmor %vm996_vm3, %vm997_vm2 }
 0x1c9   : > { %v990_v60 = vmul.f32 %v2165_v34, %v989_v38  ;;  %v873_v10 = vsub.f32 1.0, %v872_v27  ;;  %vm876_vm6 = vweird.f32 %v2358_v0  ;;  %v880_v31 = vand.u32 2147483647, %v2358_v0 }
 0x1ca   : > { %v1622_v36 = vpop.eup %1621  ;;  %v882_v1 = vand.u32 2147483648, %v2358_v0  ;;  %v999_v48 = vsel %vm998_vm5, %v1618_v35, %v995_v9  ;;  %v1135_v26 = vand.u32 2147483647, %v2388_v16  ;;  %1625 = vrcp.f32 %v2405_v49  ;;  %v2427_v34 = vpop.xlane.xlu1 %772 }
 0x1cb   : > { %1316 = vst [vmem:[%s2264_s30 + $0x50] sm:$0xff] %v990_v60  ;;  %v1127_v19 = vmul.f32 %v1622_v36, %v2388_v16  ;;  %v2429_v53 = vpop.xlane.xlu0 %770  ;;  %v1004_v4 = vsel %vm2412_vm4, %v1003_v43, %v999_v48  ;;  %v874_v59 = vmul.f32 %v1620_v50, %v873_v10  ;;  %vm877_vm7 = vweird.f32 %v1620_v50 }
 0x1cc   : > { %v1137_v23 = vand.u32 2147483648, %v2388_v16  ;;  %v1005_v2 = vmul.f32 %v2175_v56, %v1004_v4  ;;  %v1120_v35 = vand.u32 2147483647, %v2390_v7  ;;  %v1122_v41 = vand.u32 2147483648, %v2390_v7  ;;  %vm878_vm10 = vmor %vm876_vm6, %vm877_vm7  ;;  %v2450_v6 = vpop.xlane.xlu2 %786 }
 0x1cd   : > { %v1128_v44 = vsub.f32 1.0, %v1127_v19  ;;  %v875_v8 = vadd.f32 %v1620_v50, %v874_v59  ;;  %vm2437_vm8 = vcmp.eq.f32.partialorder %v880_v31, 8.507059e+37  ;;  %vm1131_vm9 = vweird.f32 %v2388_v16 }
 0x1ce   : > { %1627 = vrcp.f32 %v2427_v34  ;;  %v1624_v14 = vpop.eup %1623  ;;  %1317 = vst [vmem:[%s2264_s30 + $0x58] sm:$0xff] %v1005_v2  ;;  %v883_v56 = vor.u32 1.1754944e-38, %v882_v1  ;;  %vm1132_vm11 = vweird.f32 %v1622_v36  ;;  %vm2446_vm12 = vcmp.eq.f32.partialorder %v1135_v26, 8.507059e+37 }
 0x1cf   : > { %v1129_v11 = vmul.f32 %v1622_v36, %v1128_v44  ;;  %v879_v39 = vsel %vm878_vm10, %v1620_v50, %v875_v8  ;;  %v1138_v46 = vor.u32 1.1754944e-38, %v1137_v23  ;;  %v1112_v33 = vmul.f32 %v1624_v14, %v2390_v7  ;;  %vm1133_vm15 = vmor %vm1131_vm9, %vm1132_vm11 }
 0x1d0   : > { %vm1116_vm13 = vweird.f32 %v2390_v7  ;;  %v1626_v30 = vpop.eup %1625  ;;  %v884_v0 = vsel %vm2437_vm8, %v883_v56, %v879_v39  ;;  %vm2456_vm14 = vcmp.eq.f32.partialorder %v1120_v35, 8.507059e+37  ;;  %v1123_v15 = vor.u32 1.1754944e-38, %v1122_v41 }
 0x1d1   : > { %v1130_v52 = vadd.f32 %v1622_v36, %v1129_v11  ;;  %v885_v29 = vmul.f32 %v2177_v58, %v884_v0  ;;  %v1113_v50 = vsub.f32 1.0, %v1112_v33  ;;  %v1232_v28 = vmul.f32 %v1626_v30, %v2405_v49 }
 0x1d2   : > { %vm1236_vm0 = vweird.f32 %v2405_v49  ;;  %v1240_v40 = vand.u32 2147483647, %v2405_v49  ;;  %v1242_v38 = vand.u32 2147483648, %v2405_v49  ;;  %1629 = vrcp.f32 %v2429_v53 }
 0x1d3   : > { %v1134_v18 = vsel %vm1133_vm15, %v1622_v36, %v1130_v52  ;;  %1309 = vst [vmem:[%s2264_s30 + $0x18] sm:$0xff] %v885_v29  ;;  %v1114_v16 = vmul.f32 %v1624_v14, %v1113_v50  ;;  %vm1117_vm1 = vweird.f32 %v1624_v14  ;;  %v1233_v27 = vsub.f32 1.0, %v1232_v28  ;;  %v2475_v36 = vpop.xlane.xlu0 %818 }
 0x1d4   : > { %v1628_v51 = vpop.eup %1627  ;;  %v1139_v58 = vsel %vm2446_vm12, %v1138_v46, %v1134_v18  ;;  %vm906_vm2 = vweird.f32 %v2427_v34  ;;  %v910_v43 = vand.u32 2147483647, %v2427_v34  ;;  %vm1237_vm3 = vweird.f32 %v1626_v30  ;;  %vm1118_vm4 = vmor %vm1116_vm13, %vm1117_vm1  ;;  %v2493_v35 = vpop.xlane.xlu2 %804 }
 0x1d5   : > { %v1140_v60 = vmul.f32 %v2184_v37, %v1139_v58  ;;  %v902_v9 = vmul.f32 %v1628_v51, %v2427_v34  ;;  %v1115_v10 = vadd.f32 %v1624_v14, %v1114_v16  ;;  %v1234_v31 = vmul.f32 %v1626_v30, %v1233_v27  ;;  %vm1238_vm6 = vmor %vm1236_vm0, %vm1237_vm3 }
 0x1d6   : > { %1631 = vrcp.f32 %v2450_v6  ;;  %vm2481_vm5 = vcmp.eq.f32.partialorder %v1240_v40, 8.507059e+37  ;;  %v1243_v37 = vor.u32 1.1754944e-38, %v1242_v38  ;;  %v912_v19 = vand.u32 2147483648, %v2427_v34 }
 0x1d7   : > { %1326 = vst [vmem:[%s2264_s30 + $0xa0] sm:$0xff] %v1140_v60  ;;  %v903_v48 = vsub.f32 1.0, %v902_v9  ;;  %v1119_v26 = vsel %vm1118_vm4, %v1624_v14, %v1115_v10  ;;  %v1235_v4 = vadd.f32 %v1626_v30, %v1234_v31  ;;  %v895_v59 = vand.u32 2147483647, %v2429_v53 }
 0x1d8   : > { %1633 = vrcp.f32 %v2475_v36  ;;  %v1630_v23 = vpop.eup %1629  ;;  %v1124_v7 = vsel %vm2456_vm14, %v1123_v15, %v1119_v26  ;;  %vm907_vm7 = vweird.f32 %v1628_v51  ;;  %v897_v44 = vand.u32 2147483648, %v2429_v53 }
 0x1d9   : > { %v904_v2 = vmul.f32 %v1628_v51, %v903_v48  ;;  %v1125_v41 = vmul.f32 %v2186_v21, %v1124_v7  ;;  %v1239_v8 = vsel %vm1238_vm6, %v1626_v30, %v1235_v4  ;;  %vm2496_vm8 = vcmp.eq.f32.partialorder %v910_v43, 8.507059e+37  ;;  %vm908_vm10 = vmor %vm906_vm2, %vm907_vm7 }
 0x1da   : > { %v887_v14 = vmul.f32 %v1630_v23, %v2429_v53  ;;  %v1244_v56 = vsel %vm2481_vm5, %v1243_v37, %v1239_v8  ;;  %v913_v11 = vor.u32 1.1754944e-38, %v912_v19  ;;  %vm891_vm9 = vweird.f32 %v2429_v53  ;;  %v2515_v52 = vpop.xlane.xlu1 %790 }
 0x1db   : > { %v905_v49 = vadd.f32 %v1628_v51, %v904_v2  ;;  %1325 = vst [vmem:[%s2264_s30 + $0x98] sm:$0xff] %v1125_v41  ;;  %v1245_v39 = vmul.f32 %v2188_v55, %v1244_v56  ;;  %vm2508_vm11 = vcmp.eq.f32.partialorder %v895_v59, 8.507059e+37  ;;  %1635 = vrcp.f32 %v2493_v35  ;;  %v2524_v40 = vpop.xlane.xlu0 %788 }
 0x1dc   : > { %v1632_v63 = vpop.eup %1631  ;;  %v888_v21 = vsub.f32 1.0, %v887_v14  ;;  %v898_v30 = vor.u32 1.1754944e-38, %v897_v44  ;;  %vm1011_vm12 = vweird.f32 %v2450_v6  ;;  %vm892_vm13 = vweird.f32 %v1630_v23  ;;  %v2541_v1 = vpop.xlane.xlu2 %774 }
 0x1dd   : > { %v909_v33 = vsel %vm908_vm10, %v1628_v51, %v905_v49  ;;  %v1007_v0 = vmul.f32 %v1632_v63, %v2450_v6  ;;  %1333 = vst [vmem:[%s2264_s30 + $0xd8] sm:$0xff] %v1245_v39  ;;  %v1015_v15 = vand.u32 2147483647, %v2450_v6  ;;  %v1017_v28 = vand.u32 2147483648, %v2450_v6  ;;  %vm893_vm15 = vmor %vm891_vm9, %vm892_vm13 }
 0x1de   : > { %v1634_v55 = vpop.eup %1633  ;;  %v914_v34 = vsel %vm2496_vm8, %v913_v11, %v909_v33  ;;  %v889_v32 = vmul.f32 %v1630_v23, %v888_v21  ;;  %vm1251_vm14 = vweird.f32 %v2475_v36  ;;  %v1255_v51 = vand.u32 2147483647, %v2475_v36 }
 0x1df   : > { %v915_v29 = vmul.f32 %v2195_v12, %v914_v34  ;;  %v1008_v50 = vsub.f32 1.0, %v1007_v0  ;;  %v1247_v18 = vmul.f32 %v1634_v55, %v2475_v36  ;;  %1637 = vrcp.f32 %v2515_v52 }
 0x1e0   : > { %v890_v38 = vadd.f32 %v1630_v23, %v889_v32  ;;  %vm1012_vm0 = vweird.f32 %v1632_v63  ;;  %v1257_v16 = vand.u32 2147483648, %v2475_v36  ;;  %vm2533_vm1 = vcmp.eq.f32.partialorder %v1015_v15, 8.507059e+37 }
 0x1e1   : > { %1311 = vst [vmem:[%s2264_s30 + $0x28] sm:$0xff] %v915_v29  ;;  %v1009_v58 = vmul.f32 %v1632_v63, %v1008_v50  ;;  %v1248_v12 = vsub.f32 1.0, %v1247_v18  ;;  %v1636_v27 = vpop.eup %1635  ;;  %vm1252_vm2 = vweird.f32 %v1634_v55  ;;  %1639 = vrcp.f32 %v2524_v40  ;;  %vm1013_vm3 = vmor %vm1011_vm12, %vm1012_vm0 }
 0x1e2   : > { %v894_v60 = vsel %vm893_vm15, %v1630_v23, %v890_v38  ;;  %v1142_v31 = vmul.f32 %v1636_v27, %v2493_v35  ;;  %v1018_v48 = vor.u32 1.1754944e-38, %v1017_v28  ;;  %vm2546_vm4 = vcmp.eq.f32.partialorder %v1255_v51, 8.507059e+37  ;;  %vm1253_vm5 = vmor %vm1251_vm14, %vm1252_vm2  ;;  %v2569_v11 = vpop.xlane.xlu1 %808 }
 0x1e3   : > { %v899_v43 = vsel %vm2508_vm11, %v898_v30, %v894_v60  ;;  %v1010_v53 = vadd.f32 %v1632_v63, %v1009_v58  ;;  %v1249_v10 = vmul.f32 %v1634_v55, %v1248_v12  ;;  %v1150_v26 = vand.u32 2147483647, %v2493_v35  ;;  %v2574_v46 = vpop.xlane.xlu0 %806 }
 0x1e4   : > { %v900_v37 = vmul.f32 %v2197_v17, %v899_v43  ;;  %v1258_v23 = vor.u32 1.1754944e-38, %v1257_v16  ;;  %v1143_v7 = vsub.f32 1.0, %v1142_v31  ;;  %vm1147_vm6 = vweird.f32 %v1636_v27  ;;  %v2594_v60 = vpop.xlane.xlu2 %792 }
 0x1e5   : > { %v1014_v4 = vsel %vm1013_vm3, %v1632_v63, %v1010_v53  ;;  %v1250_v59 = vadd.f32 %v1634_v55, %v1249_v10  ;;  %v1638_v2 = vpop.eup %1637  ;;  %v1152_v6 = vand.u32 2147483648, %v2493_v35  ;;  %1641 = vrcp.f32 %v2541_v1 }
 0x1e6   : > { %1310 = vst [vmem:[%s2264_s30 + $0x20] sm:$0xff] %v900_v37  ;;  %v1019_v17 = vsel %vm2533_vm1, %v1018_v48, %v1014_v4  ;;  %v1144_v8 = vmul.f32 %v1636_v27, %v1143_v7  ;;  %v1037_v13 = vmul.f32 %v1638_v2, %v2515_v52  ;;  %vm1146_vm7 = vweird.f32 %v2493_v35 }
 0x1e7   : > { %v1020_v44 = vmul.f32 %v2199_v47, %v1019_v17  ;;  %v1254_v41 = vsel %vm1253_vm5, %v1634_v55, %v1250_v59  ;;  %v1640_v14 = vpop.eup %1639  ;;  %vm2564_vm8 = vcmp.eq.f32.partialorder %v1150_v26, 8.507059e+37  ;;  %v1045_v49 = vand.u32 2147483647, %v2515_v52  ;;  %vm1148_vm9 = vmor %vm1146_vm7, %vm1147_vm6 }
 0x1e8   : > { %v1259_v56 = vsel %vm2546_vm4, %v1258_v23, %v1254_v41  ;;  %v1145_v63 = vadd.f32 %v1636_v27, %v1144_v8  ;;  %v1038_v39 = vsub.f32 1.0, %v1037_v13  ;;  %v1022_v21 = vmul.f32 %v1640_v14, %v2524_v40 }
 0x1e9   : > { %1318 = vst [vmem:[%s2264_s30 + $0x60] sm:$0xff] %v1020_v44  ;;  %v1260_v47 = vmul.f32 %v2207_v62, %v1259_v56  ;;  %v1153_v35 = vor.u32 1.1754944e-38, %v1152_v6  ;;  %vm1042_vm10 = vweird.f32 %v1638_v2  ;;  %v1047_v33 = vand.u32 2147483648, %v2515_v52 }
 0x1ea   : > { %v1030_v30 = vand.u32 2147483647, %v2524_v40  ;;  %v1149_v0 = vsel %vm1148_vm9, %v1636_v27, %v1145_v63  ;;  %v1039_v55 = vmul.f32 %v1638_v2, %v1038_v39  ;;  %v1023_v34 = vsub.f32 1.0, %v1022_v21  ;;  %v2598_v37 = vpop.xlane.xlu1 %820 }
 0x1eb   : > { %1334 = vst [vmem:[%s2264_s30 + $0xe0] sm:$0xff] %v1260_v47  ;;  %1643 = vrcp.f32 %v2569_v11  ;;  %v1642_v62 = vpop.eup %1641  ;;  %v1154_v32 = vsel %vm2564_vm8, %v1153_v35, %v1149_v0  ;;  %vm1041_vm11 = vweird.f32 %v2515_v52  ;;  %vm1027_vm12 = vweird.f32 %v1640_v14  ;;  %v2604_v26 = vpop.xlane.xlu0 %776 }
 0x1ec   : > { %v1032_v15 = vand.u32 2147483648, %v2524_v40  ;;  %v1155_v29 = vmul.f32 %v2209_v25, %v1154_v32  ;;  %v1040_v50 = vadd.f32 %v1638_v2, %v1039_v55  ;;  %v1024_v28 = vmul.f32 %v1640_v14, %v1023_v34  ;;  %vm1043_vm13 = vmor %vm1041_vm11, %vm1042_vm10  ;;  %v2619_v47 = vpop.xlane.xlu2 %822 }
 0x1ed   : > { %v917_v18 = vmul.f32 %v1642_v62, %v2541_v1  ;;  %vm1046_vm14 = vcmp.eq.f32.partialorder %v1045_v49, 8.507059e+37  ;;  %v1048_v38 = vor.u32 1.1754944e-38, %v1047_v33  ;;  %vm1026_vm15 = vweird.f32 %v2524_v40 }
 0x1ee   : > { %1645 = vrcp.f32 %v2574_v46  ;;  %1327 = vst [vmem:[%s2264_s30 + $0xa8] sm:$0xff] %v1155_v29  ;;  %v1044_v51 = vsel %vm1043_vm13, %v1638_v2, %v1040_v50  ;;  %v1025_v52 = vadd.f32 %v1640_v14, %v1024_v28  ;;  %vm1031_vm0 = vcmp.eq.f32.partialorder %v1030_v30, 8.507059e+37  ;;  %vm1028_vm1 = vmor %vm1026_vm15, %vm1027_vm12 }
 0x1ef   : > { %v918_v58 = vsub.f32 1.0, %v917_v18  ;;  %v1049_v12 = vsel %vm1046_vm14, %v1048_v38, %v1044_v51  ;;  %v1033_v25 = vor.u32 1.1754944e-38, %v1032_v15  ;;  %v925_v16 = vand.u32 2147483647, %v2541_v1 }
 0x1f0   : > { %v927_v27 = vand.u32 2147483648, %v2541_v1  ;;  %v1050_v40 = vmul.f32 %v2216_v42, %v1049_v12  ;;  %v1029_v43 = vsel %vm1028_vm1, %v1640_v14, %v1025_v52  ;;  %vm922_vm2 = vweird.f32 %v1642_v62 }
 0x1f1   : > { %v1644_v9 = vpop.eup %1643  ;;  %v919_v53 = vmul.f32 %v1642_v62, %v918_v58  ;;  %v1034_v10 = vsel %vm1031_vm0, %v1033_v25, %v1029_v43  ;;  %vm921_vm3 = vweird.f32 %v2541_v1  ;;  %1647 = vrcp.f32 %v2594_v60 }
 0x1f2   : > { %v1172_v31 = vmul.f32 %v1644_v9, %v2569_v11  ;;  %1320 = vst [vmem:[%s2264_s30 + $0x70] sm:$0xff] %v1050_v40  ;;  %v1035_v48 = vmul.f32 %v2218_v54, %v1034_v10  ;;  %vm923_vm4 = vmor %vm921_vm3, %vm922_vm2  ;;  %vm926_vm5 = vcmp.eq.f32.partialorder %v925_v16, 8.507059e+37  ;;  %v928_v4 = vor.u32 1.1754944e-38, %v927_v27 }
 0x1f3   : > { %v920_v19 = vadd.f32 %v1642_v62, %v919_v53  ;;  %v1182_v7 = vand.u32 2147483648, %v2569_v11  ;;  %1649 = vrcp.f32 %v2598_v37  ;;  %vm1177_vm6 = vweird.f32 %v1644_v9  ;;  %v2627_v34 = vpop.xlane.xlu0 %824 }
 0x1f4   : > { %v1646_v42 = vpop.eup %1645  ;;  %v1173_v59 = vsub.f32 1.0, %v1172_v31  ;;  %1319 = vst [vmem:[%s2264_s30 + $0x68] sm:$0xff] %v1035_v48  ;;  %v1180_v17 = vand.u32 2147483647, %v2569_v11  ;;  %v1165_v41 = vand.u32 2147483647, %v2574_v46  ;;  %vm1176_vm7 = vweird.f32 %v2569_v11 }
 0x1f5   : > { %v924_v23 = vsel %vm923_vm4, %v1642_v62, %v920_v19  ;;  %v1157_v2 = vmul.f32 %v1646_v42, %v2574_v46  ;;  %v1167_v8 = vand.u32 2147483648, %v2574_v46  ;;  %1651 = vrcp.f32 %v2604_v26  ;;  %vm1178_vm8 = vmor %vm1176_vm7, %vm1177_vm6 }
 0x1f6   : > { %v929_v54 = vsel %vm926_vm5, %v928_v4, %v924_v23  ;;  %v1174_v1 = vmul.f32 %v1644_v9, %v1173_v59  ;;  %v1183_v56 = vor.u32 1.1754944e-38, %v1182_v7  ;;  %vm1162_vm9 = vweird.f32 %v1646_v42 }
 0x1f7   : > { %v930_v6 = vmul.f32 %v2221_v61, %v929_v54  ;;  %v1158_v44 = vsub.f32 1.0, %v1157_v2  ;;  %v1648_v14 = vpop.eup %1647  ;;  %vm1181_vm10 = vcmp.eq.f32.partialorder %v1180_v17, 8.507059e+37  ;;  %vm1161_vm11 = vweird.f32 %v2574_v46 }
 0x1f8   : > { %v1175_v13 = vadd.f32 %v1644_v9, %v1174_v1  ;;  %v1052_v61 = vmul.f32 %v1648_v14, %v2594_v60  ;;  %vm1166_vm12 = vcmp.eq.f32.partialorder %v1165_v41, 8.507059e+37  ;;  %v1168_v21 = vor.u32 1.1754944e-38, %v1167_v8  ;;  %vm1163_vm13 = vmor %vm1161_vm11, %vm1162_vm9 }
 0x1f9   : > { %1312 = vst [vmem:[%s2264_s30 + $0x30] sm:$0xff] %v930_v6  ;;  %v1159_v36 = vmul.f32 %v1646_v42, %v1158_v44  ;;  %v1650_v63 = vpop.eup %1649  ;;  %vm1056_vm14 = vweird.f32 %v2594_v60  ;;  %v1060_v46 = vand.u32 2147483647, %v2594_v60  ;;  %v1062_v55 = vand.u32 2147483648, %v2594_v60 }
 0x1fa   : > { %v1179_v49 = vsel %vm1178_vm8, %v1644_v9, %v1175_v13  ;;  %v1053_v33 = vsub.f32 1.0, %v1052_v61  ;;  %v1262_v30 = vmul.f32 %v1650_v63, %v2598_v37  ;;  %1653 = vrcp.f32 %v2619_v47 }
 0x1fb   : > { %v1184_v39 = vsel %vm1181_vm10, %v1183_v56, %v1179_v49  ;;  %v1160_v11 = vadd.f32 %v1646_v42, %v1159_v36  ;;  %v1652_v62 = vpop.eup %1651  ;;  %vm1057_vm15 = vweird.f32 %v1648_v14  ;;  %v1270_v50 = vand.u32 2147483647, %v2598_v37 }
 0x1fc   : > { %v1185_v35 = vmul.f32 %v2228_v22, %v1184_v39  ;;  %v1054_v22 = vmul.f32 %v1648_v14, %v1053_v33  ;;  %v1263_v15 = vsub.f32 1.0, %v1262_v30  ;;  %v1272_v28 = vand.u32 2147483648, %v2598_v37  ;;  %vm1058_vm1 = vmor %vm1056_vm14, %vm1057_vm15 }
 0x1fd   : > { %v1164_v0 = vsel %vm1163_vm13, %v1646_v42, %v1160_v11  ;;  %v932_v18 = vmul.f32 %v1652_v62, %v2604_v26  ;;  %vm1267_vm0 = vweird.f32 %v1650_v63  ;;  %1655 = vrcp.f32 %v2627_v34 }
 0x1fe   : > { %1329 = vst [vmem:[%s2264_s30 + $0xb8] sm:$0xff] %v1185_v35  ;;  %v1169_v32 = vsel %vm1166_vm12, %v1168_v21, %v1164_v0  ;;  %v1055_v38 = vadd.f32 %v1648_v14, %v1054_v22  ;;  %v1264_v51 = vmul.f32 %v1650_v63, %v1263_v15  ;;  %vm1061_vm2 = vcmp.eq.f32.partialorder %v1060_v46, 8.507059e+37 }
 0x1ff   : > { %v1170_v29 = vmul.f32 %v2230_v3, %v1169_v32  ;;  %v1063_v52 = vor.u32 1.1754944e-38, %v1062_v55  ;;  %vm1266_vm3 = vweird.f32 %v2598_v37  ;;  %v933_v3 = vsub.f32 1.0, %v932_v18 }
 0x200   : > { %v1059_v58 = vsel %vm1058_vm1, %v1648_v14, %v1055_v38  ;;  %v1265_v12 = vadd.f32 %v1650_v63, %v1264_v51  ;;  %v940_v25 = vand.u32 2147483647, %v2604_v26  ;;  %v942_v16 = vand.u32 2147483648, %v2604_v26  ;;  %v1654_v27 = vpop.eup %1653  ;;  %vm1268_vm4 = vmor %vm1266_vm3, %vm1267_vm0 }
 0x201   : > { %1328 = vst [vmem:[%s2264_s30 + $0xb0] sm:$0xff] %v1170_v29  ;;  %v1064_v9 = vsel %vm1061_vm2, %v1063_v52, %v1059_v58  ;;  %v1273_v40 = vor.u32 1.1754944e-38, %v1272_v28  ;;  %v934_v43 = vmul.f32 %v1652_v62, %v933_v3  ;;  %vm937_vm5 = vweird.f32 %v1652_v62 }
 0x202   : > { %v1065_v60 = vmul.f32 %v2233_v45, %v1064_v9  ;;  %v1269_v53 = vsel %vm1268_vm4, %v1650_v63, %v1265_v12  ;;  %vm1271_vm6 = vcmp.eq.f32.partialorder %v1270_v50, 8.507059e+37  ;;  %v1277_v10 = vmul.f32 %v1654_v27, %v2619_v47 }
 0x203   : > { %v1274_v31 = vsel %vm1271_vm6, %v1273_v40, %v1269_v53  ;;  %v935_v37 = vadd.f32 %v1652_v62, %v934_v43  ;;  %vm936_vm7 = vweird.f32 %v2604_v26  ;;  %v1656_v48 = vpop.eup %1655  ;;  %v943_v42 = vor.u32 1.1754944e-38, %v942_v16 }
 0x204   : > { %1321 = vst [vmem:[%s2264_s30 + $0x78] sm:$0xff] %v1065_v60  ;;  %v1275_v19 = vmul.f32 %v2238_v5, %v1274_v31  ;;  %vm938_vm8 = vmor %vm936_vm7, %vm937_vm5  ;;  %v1278_v4 = vsub.f32 1.0, %v1277_v10  ;;  %vm941_vm9 = vcmp.eq.f32.partialorder %v940_v25, 8.507059e+37  ;;  %v1287_v45 = vand.u32 2147483648, %v2619_v47 }
 0x205   : > { %v939_v59 = vsel %vm938_vm8, %v1652_v62, %v935_v37  ;;  %v1292_v23 = vmul.f32 %v1656_v48, %v2627_v34  ;;  %vm1282_vm10 = vweird.f32 %v1654_v27  ;;  %v1285_v26 = vand.u32 2147483647, %v2619_v47 }
 0x206   : > { %1335 = vst [vmem:[%s2264_s30 + $0xe8] sm:$0xff] %v1275_v19  ;;  %v944_v7 = vsel %vm941_vm9, %v943_v42, %v939_v59  ;;  %v1279_v2 = vmul.f32 %v1654_v27, %v1278_v4  ;;  %vm1281_vm11 = vweird.f32 %v2619_v47  ;;  %v1302_v17 = vand.u32 2147483648, %v2627_v34 }
 0x207   : > { %v945_v54 = vmul.f32 %v2240_v24, %v944_v7  ;;  %v1293_v5 = vsub.f32 1.0, %v1292_v23  ;;  %vm1283_vm12 = vmor %vm1281_vm11, %vm1282_vm10  ;;  %v1288_v6 = vor.u32 1.1754944e-38, %v1287_v45  ;;  %vm1297_vm13 = vweird.f32 %v1656_v48 }
 0x208   : > { %v1280_v1 = vadd.f32 %v1654_v27, %v1279_v2  ;;  %v1300_v41 = vand.u32 2147483647, %v2627_v34  ;;  %vm1286_vm14 = vcmp.eq.f32.partialorder %v1285_v26, 8.507059e+37  ;;  %vm1296_vm15 = vweird.f32 %v2627_v34 }
 0x209   : > { %1313 = vst [vmem:[%s2264_s30 + $0x38] sm:$0xff] %v945_v54  ;;  %v1294_v44 = vmul.f32 %v1656_v48, %v1293_v5  ;;  %vm1298_vm0 = vmor %vm1296_vm15, %vm1297_vm13  ;;  %v1303_v56 = vor.u32 1.1754944e-38, %v1302_v17 }
 0x20a   : > { %v1284_v24 = vsel %vm1283_vm12, %v1654_v27, %v1280_v1  ;;  %vm1301_vm1 = vcmp.eq.f32.partialorder %v1300_v41, 8.507059e+37 }
 0x20b   : > { %v1289_v8 = vsel %vm1286_vm14, %v1288_v6, %v1284_v24  ;;  %v1295_v13 = vadd.f32 %v1656_v48, %v1294_v44 }
 0x20c   : > { %v1290_v14 = vmul.f32 %v2243_v57, %v1289_v8 }
 0x20d   : > { %v1299_v36 = vsel %vm1298_vm0, %v1656_v48, %v1295_v13 }
 0x20e   : > { %1336 = vst [vmem:[%s2264_s30 + $0xf0] sm:$0xff] %v1290_v14  ;;  %v1304_v49 = vsel %vm1301_vm1, %v1303_v56, %v1299_v36 }
 0x20f   : > { %v1305_v61 = vmul.f32 %v2247_v20, %v1304_v49 }
 0x211   : > { %1337 = vst [vmem:[%s2264_s30 + $0xf8] sm:$0xff] %v1305_v61 }
 0x212   : > { %1684 = shalt.err (!%p1681_p3)
}
 0x213   : > { %s1721_s27 = smov 128   ;;  %s1722_s28 = smov 8  }
 0x214   : > { %1487 = dma.vmem_to_hbm [thread:$0]  (%p1786_p5), %s1352_s19, 4096, %s1354_s9, %s1339_s10, %s1721_s27, %s1721_s27, %s1722_s28  }
 0x215 PF: > { %p1493_p4 = scmp.ge.s32.totalorder %s1719_s18, 2  ;;  %s1368_s29 = sand.u32 1, %s1707_s15  }
 0x216   : > { %s1369_s30 = scalar_lea.sflag [#allocation3], %s1368_s29 }
 0x217   : > { %p1490_p7 = pnand %p1493_p4, %p1790_p6 }
 0x219   : > { %p1491_p8 = pneg %p1490_p7 }
 0x21b   : > { %1702 = dma.done.wait (%p1491_p8), %s1369_s30, 4096  }
 0x21c   : > { %1704 = vsyncadd (%p1491_p8), %s1369_s30, 4294963200  ;;  %p14_p9 = scmp.ge.s32.totalorder %s1773_s21, 4   ;;  %s2733_s15 = smov %s1711_s16 }
 0x21d   : > { %s2734_s16 = smov %s1715_s17  ;;  %s2735_s17 = smov %s1784_s24 }
 0x21e   : > { %s2736_s18 = smov %s1773_s21  ;;  %16 = sbr.rel (!%p14_p9) target bundleno = 3 (0x3), region = 74 }
 0x223   :  { %1375 = vsyncpa [#allocation3], 1 }
 0x224   :  { %1377 = vsyncpa [#allocation3 + $0x1], 1 }

</bundles_post_ra>
